<compile_context>
chip_gen: v7x
topology: tpu7x:2x2x1
jax: 0.10.0
libtpu: 0.0.40
codegen_flags: <defaults>
</compile_context>

<pallas_src>
import functools

import jax
import jax.numpy as jnp
from jax import lax
from jax.experimental import pallas as pl
from jax.experimental.pallas import tpu as pltpu

LN_EPS = 1e-5  # torch nn.LayerNorm default


# ----------------------------------------------------------------------------
# In-kernel math helpers (all f32)
# ----------------------------------------------------------------------------
def _layernorm(x, g, b):
    mu = jnp.mean(x, axis=-1, keepdims=True)
    var = jnp.mean(jnp.square(x - mu), axis=-1, keepdims=True)
    return (x - mu) * lax.rsqrt(var + LN_EPS) * g + b


def _gelu_tanh(x):
    # tanh-approx GELU (runs on the EUP); torch nn.GELU() default is exact-erf,
    # max abs difference ~1e-3 — accepted per perf review.
    c = 0.7978845608028654  # sqrt(2/pi)
    return 0.5 * x * (1.0 + jnp.tanh(c * (x + 0.044715 * x * x * x)))


# ----------------------------------------------------------------------------
# Fused kernel: one grid step == one (batch, layer) of PerceiverAttention + FF
# ----------------------------------------------------------------------------
def _resampler_kernel(
    # per-batch input
    x_ref,
    # resident inputs (constant block index -> fetched once)
    lat0_ref, pin_w_ref, pin_b_ref,
    # per-layer inputs (leading depth axis selected by index_map)
    ln_ref, qw_ref, kw_ref, vw_ref, ow_ref, w1_ref, w2_ref,
    # resident inputs (output projection / final LN)
    pout_w_ref, pout_b_ref, nog_ref, nob_ref,
    # output (per-batch block)
    o_ref,
    # scratch (persists across the depth axis for the current batch)
    xp_scr, lat_scr,
    *, heads, dim_head):
    d = pl.program_id(1)
    nq, dim = lat_scr.shape
    dh = dim_head
    inner = heads * dh

    # ---- prologue (first layer of this batch): proj_in + latent init --------
    @pl.when(d == 0)
    def _prologue():
        xb = x_ref[0].astype(jnp.bfloat16)                      # (n1, emb)
        xp = jnp.dot(xb, pin_w_ref[...], preferred_element_type=jnp.float32)
        xp_scr[...] = xp + pin_b_ref[...]                       # f32 residents
        lat_scr[...] = lat0_ref[0]                              # single store

    lnp = ln_ref[0]            # (8, dim): n1_g, n1_b, n2_g, n2_b, ff_g, ff_b, pad, pad
    lat = lat_scr[...]         # (nq, dim) f32 residual stream

    # ---- PerceiverAttention --------------------------------------------------
    xn = _layernorm(xp_scr[...], lnp[0:1], lnp[1:2])            # (n1, dim) f32
    ln_lat = _layernorm(lat, lnp[2:3], lnp[3:4])                # (nq, dim) f32
    lnb = ln_lat.astype(jnp.bfloat16)

    q = jnp.dot(lnb, qw_ref[0], preferred_element_type=jnp.float32)   # (nq, inner)
    q = (q * (float(dh) ** -0.5)).astype(jnp.bfloat16)                # torch (q*s)@(k*s)^T

    # kv_input = cat((x, latents), dim=-2) built ONCE; one matmul for k, one for v
    kvin = jnp.concatenate([xn, ln_lat], axis=0).astype(jnp.bfloat16)  # (n1+nq, dim)
    k = jnp.dot(kvin, kw_ref[0], preferred_element_type=jnp.float32).astype(jnp.bfloat16)
    v = jnp.dot(kvin, vw_ref[0], preferred_element_type=jnp.float32).astype(jnp.bfloat16)

    # Per-head attention with real dim_head-wide contractions (no lane-mask
    # full-inner matmuls): contraction width is dh, not heads*dh.
    head_outs = []
    for h in range(heads):
        sl = slice(h * dh, (h + 1) * dh)
        w = lax.dot_general(q[:, sl], k[:, sl], (((1,), (1,)), ((), ())),
                            preferred_element_type=jnp.float32)       # (nq, n1+nq)
        w = w - jnp.max(w, axis=-1, keepdims=True)
        e = jnp.exp(w)
        p = e * pl.reciprocal(jnp.sum(e, axis=-1, keepdims=True), approx=True)
        head_outs.append(jnp.dot(p.astype(jnp.bfloat16), v[:, sl],
                                 preferred_element_type=jnp.float32))  # (nq, dh)
    attn = jnp.concatenate(head_outs, axis=-1).astype(jnp.bfloat16)    # (nq, inner)
    lat = lat + jnp.dot(attn, ow_ref[0], preferred_element_type=jnp.float32)  # residual 1

    # ---- FeedForward: LN -> Linear (no bias) -> GELU -> Linear (no bias) -----
    hff = _layernorm(lat, lnp[4:5], lnp[5:6]).astype(jnp.bfloat16)
    h1 = jnp.dot(hff, w1_ref[0], preferred_element_type=jnp.float32)
    g = _gelu_tanh(h1).astype(jnp.bfloat16)
    lat = lat + jnp.dot(g, w2_ref[0], preferred_element_type=jnp.float32)      # residual 2

    lat_scr[...] = lat

    # ---- epilogue (last layer of this batch): proj_out + norm_out ------------
    @pl.when(d == pl.num_programs(1) - 1)
    def _epilogue():
        y = jnp.dot(lat.astype(jnp.bfloat16), pout_w_ref[...],
                    preferred_element_type=jnp.float32) + pout_b_ref[...]
        y = _layernorm(y, nog_ref[...], nob_ref[...])
        # NOTE: at the deployed out_dim (1024) this store is lane-dense; at the
        # toy out_dim=64 it falls back to masked stores (negligible epilogue).
        o_ref[0] = y.astype(o_ref.dtype)


# ----------------------------------------------------------------------------
# Wrapper: one pallas_call for the whole forward pass
# ----------------------------------------------------------------------------
def resampler_forward(x, params, *, heads, dim_head):
    b, n1, emb = x.shape
    dim = params["proj_in_w"].shape[1]
    inner = heads * dim_head
    nq = params["latents"].shape[1]
    depth = params["to_q_w"].shape[0]
    out_dim = params["proj_out_w"].shape[1]
    ff_inner = params["ff_w1"].shape[2]

    bf16 = jnp.bfloat16
    # to_kv followed by chunk(2, dim=-1) == two independent projections with the
    # column-split weight halves.  Weights are pre-cast to bf16 so the per-layer
    # streaming DMA and the double-buffer footprint are halved.
    k_w = params["to_kv_w"][:, :, :inner].astype(bf16)
    v_w = params["to_kv_w"][:, :, inner:].astype(bf16)

    # Pack the six per-layer LayerNorm vectors into one sublane-aligned tensor.
    ln_pack = jnp.stack([params["norm1_g"], params["norm1_b"],
                         params["norm2_g"], params["norm2_b"],
                         params["ff_ln_g"], params["ff_ln_b"]], axis=1)      # (depth, 6, dim)
    ln_pack = jnp.concatenate(
        [ln_pack, jnp.zeros((depth, 2, dim), ln_pack.dtype)], axis=1)        # (depth, 8, dim)

    inputs = (
        x,                                                   # per-batch
        params["latents"],                                   # resident
        params["proj_in_w"].astype(bf16),                    # resident
        params["proj_in_b"].reshape(1, dim),                 # resident (f32)
        ln_pack,                                             # per-layer (7 tensors)
        params["to_q_w"].astype(bf16),
        k_w,
        v_w,
        params["to_out_w"].astype(bf16),
        params["ff_w1"].astype(bf16),
        params["ff_w2"].astype(bf16),
        params["proj_out_w"].astype(bf16),                   # resident
        params["proj_out_b"].reshape(1, out_dim),
        params["norm_out_g"].reshape(1, out_dim),
        params["norm_out_b"].reshape(1, out_dim),
    )

    def const_spec(a):
        nd = a.ndim
        return pl.BlockSpec(a.shape, lambda bi, d, _nd=nd: (0,) * _nd)

    def batch_spec(a):
        nd = a.ndim
        return pl.BlockSpec((1,) + a.shape[1:],
                            lambda bi, d, _nd=nd: (bi,) + (0,) * (_nd - 1))

    def layer_spec(a):
        nd = a.ndim
        return pl.BlockSpec((1,) + a.shape[1:],
                            lambda bi, d, _nd=nd: (d,) + (0,) * (_nd - 1))

    in_specs = [
        batch_spec(inputs[0]),
        const_spec(inputs[1]), const_spec(inputs[2]), const_spec(inputs[3]),
        layer_spec(inputs[4]), layer_spec(inputs[5]), layer_spec(inputs[6]),
        layer_spec(inputs[7]), layer_spec(inputs[8]), layer_spec(inputs[9]),
        layer_spec(inputs[10]),
        const_spec(inputs[11]), const_spec(inputs[12]),
        const_spec(inputs[13]), const_spec(inputs[14]),
    ]

    # VMEM budget: double-buffered bf16 per-layer weight set + residents + scratch,
    # clamped to the v7x physical budget (64 MiB).
    # TODO(synk): if a production config exceeds 64 MiB, stream ff_w1/ff_w2 over a
    # K-chunk inner pipeline (pltpu.emit_pipeline) instead of loading whole FF weights.
    per_layer = 2 * (4 * dim * inner + 2 * dim * ff_inner) + 4 * 8 * dim
    resident = (4 * nq * dim + 2 * emb * dim + 2 * dim * out_dim
                + 4 * (dim + 3 * out_dim))
    streamed = 2 * (4 * n1 * emb + 4 * nq * out_dim)
    scratch = 4 * (n1 * dim + nq * dim)
    work = 4 * ((n1 + nq) * (dim + 2 * inner) + nq * (2 * ff_inner + 4 * inner))
    est = 2 * per_layer + resident + streamed + scratch + work
    vmem_limit = int(min(64 * 2 ** 20, max(32 * 2 ** 20, 2 * est)))

    kernel = functools.partial(_resampler_kernel, heads=heads, dim_head=dim_head)

    return pl.pallas_call(
        kernel,
        out_shape=jax.ShapeDtypeStruct((b, nq, out_dim), x.dtype),
        grid=(b, depth),
        in_specs=in_specs,
        out_specs=pl.BlockSpec((1, nq, out_dim), lambda bi, d: (bi, 0, 0)),
        scratch_shapes=[
            pltpu.VMEM((n1, dim), jnp.float32),   # proj_in(x) for current batch
            pltpu.VMEM((nq, dim), jnp.float32),   # latents residual stream
        ],
        compiler_params=pltpu.CompilerParams(
            # batch is independent (megacore-shardable on v7x); depth carries
            # the VMEM residual stream, so it must stay sequential.
            dimension_semantics=("parallel", "arbitrary"),
            vmem_limit_bytes=vmem_limit,
        ),
    )(*inputs)


# ----------------------------------------------------------------------------
# Deterministic parameter init (shapes per Resampler.__init__; synthetic values,
# per-layer weights pre-stacked on a leading depth axis)
# ----------------------------------------------------------------------------
def init_params(key, *, dim, depth, dim_head, heads, num_queries,
                embedding_dim, output_dim, ff_mult):
    inner = dim_head * heads
    ff_inner = int(dim * ff_mult)
    ks = jax.random.split(key, 10)

    def nrm(k, shape, scale):
        return jax.random.normal(k, shape, jnp.float32) * scale

    return {
        "latents": nrm(ks[0], (1, num_queries, dim), dim ** -0.5),
        "proj_in_w": nrm(ks[1], (embedding_dim, dim), embedding_dim ** -0.5),
        "proj_in_b": nrm(ks[2], (dim,), 0.02),
        "proj_out_w": nrm(ks[3], (dim, output_dim), dim ** -0.5),
        "proj_out_b": nrm(ks[4], (output_dim,), 0.02),
        "norm_out_g": jnp.ones((output_dim,), jnp.float32),
        "norm_out_b": jnp.zeros((output_dim,), jnp.float32),
        # per-layer weights, stacked on leading depth axis
        "norm1_g": jnp.ones((depth, dim), jnp.float32),
        "norm1_b": jnp.zeros((depth, dim), jnp.float32),
        "norm2_g": jnp.ones((depth, dim), jnp.float32),
        "norm2_b": jnp.zeros((depth, dim), jnp.float32),
        "to_q_w": nrm(ks[5], (depth, dim, inner), dim ** -0.5),
        "to_kv_w": nrm(ks[6], (depth, dim, 2 * inner), dim ** -0.5),
        "to_out_w": nrm(ks[7], (depth, inner, dim), inner ** -0.5),
        "ff_ln_g": jnp.ones((depth, dim), jnp.float32),
        "ff_ln_b": jnp.zeros((depth, dim), jnp.float32),
        "ff_w1": nrm(ks[8], (depth, dim, ff_inner), dim ** -0.5),
        "ff_w2": nrm(ks[9], (depth, ff_inner, dim), ff_inner ** -0.5),
    }


if __name__ == "__main__":
    # Small, consistent config: dim=64, depth=2, dim_head=16, heads=4,
    # num_queries=8, embedding_dim=32, output_dim=64, ff_mult=4.
    DIM, DEPTH, DIM_HEAD, HEADS = 64, 2, 16, 4
    NUM_QUERIES, EMB_DIM, OUT_DIM, FF_MULT = 8, 32, 64, 4
    B, N = 2, 16

    key = jax.random.PRNGKey(0)
    kx, kp = jax.random.split(key)
    x = jax.random.normal(kx, (B, N, EMB_DIM), jnp.float32)
    params = init_params(
        kp, dim=DIM, depth=DEPTH, dim_head=DIM_HEAD, heads=HEADS,
        num_queries=NUM_QUERIES, embedding_dim=EMB_DIM,
        output_dim=OUT_DIM, ff_mult=FF_MULT)

    fwd = jax.jit(functools.partial(resampler_forward, heads=HEADS, dim_head=DIM_HEAD))
    out = jax.block_until_ready(fwd(x, params))
    assert out.shape == (B, NUM_QUERIES, OUT_DIM)
    assert bool(jnp.all(jnp.isfinite(out)))
    print("KERNEL_OK")
</pallas_src>

<mosaic_0001>
module attributes {stable_mosaic.version = 11 : i64} {
  func.func @_resampler_kernel(%arg0: i32, %arg1: i32, %arg2: memref<1x16x32xf32, #tpu.memory_space<vmem>>, %arg3: memref<1x8x64xf32, #tpu.memory_space<vmem>>, %arg4: memref<32x64xbf16, #tpu.memory_space<vmem>>, %arg5: memref<1x64xf32, #tpu.memory_space<vmem>>, %arg6: memref<1x8x64xf32, #tpu.memory_space<vmem>>, %arg7: memref<1x64x64xbf16, #tpu.memory_space<vmem>>, %arg8: memref<1x64x64xbf16, #tpu.memory_space<vmem>>, %arg9: memref<1x64x64xbf16, #tpu.memory_space<vmem>>, %arg10: memref<1x64x64xbf16, #tpu.memory_space<vmem>>, %arg11: memref<1x64x256xbf16, #tpu.memory_space<vmem>>, %arg12: memref<1x256x64xbf16, #tpu.memory_space<vmem>>, %arg13: memref<64x64xbf16, #tpu.memory_space<vmem>>, %arg14: memref<1x64xf32, #tpu.memory_space<vmem>>, %arg15: memref<1x64xf32, #tpu.memory_space<vmem>>, %arg16: memref<1x64xf32, #tpu.memory_space<vmem>>, %arg17: memref<1x8x64xf32, #tpu.memory_space<vmem>>, %arg18: memref<16x64xf32, #tpu.memory_space<vmem>>, %arg19: memref<8x64xf32, #tpu.memory_space<vmem>>) attributes {dimension_semantics = [#tpu.dimension_semantics<parallel>, #tpu.dimension_semantics<arbitrary>], iteration_bounds = array<i64: 2, 2>, scalar_prefetch = 0 : i64, scratch_operands = 2 : i64, tpu.core_type = #tpu.core_type<tc>, window_params = [{transform_indices = @transform_0, window_bounds = array<i64: 1, 16, 32>}, {pipeline_mode = #tpu.pipeline_mode<synchronous>, transform_indices = @transform_1, window_bounds = array<i64: 1, 8, 64>}, {pipeline_mode = #tpu.pipeline_mode<synchronous>, transform_indices = @transform_2, window_bounds = array<i64: 32, 64>}, {pipeline_mode = #tpu.pipeline_mode<synchronous>, transform_indices = @transform_3, window_bounds = array<i64: 1, 64>}, {transform_indices = @transform_4, window_bounds = array<i64: 1, 8, 64>}, {transform_indices = @transform_5, window_bounds = array<i64: 1, 64, 64>}, {transform_indices = @transform_6, window_bounds = array<i64: 1, 64, 64>}, {transform_indices = @transform_7, window_bounds = array<i64: 1, 64, 64>}, {transform_indices = @transform_8, window_bounds = array<i64: 1, 64, 64>}, {transform_indices = @transform_9, window_bounds = array<i64: 1, 64, 256>}, {transform_indices = @transform_10, window_bounds = array<i64: 1, 256, 64>}, {pipeline_mode = #tpu.pipeline_mode<synchronous>, transform_indices = @transform_11, window_bounds = array<i64: 64, 64>}, {pipeline_mode = #tpu.pipeline_mode<synchronous>, transform_indices = @transform_12, window_bounds = array<i64: 1, 64>}, {pipeline_mode = #tpu.pipeline_mode<synchronous>, transform_indices = @transform_13, window_bounds = array<i64: 1, 64>}, {pipeline_mode = #tpu.pipeline_mode<synchronous>, transform_indices = @transform_14, window_bounds = array<i64: 1, 64>}, {transform_indices = @transform_15, window_bounds = array<i64: 1, 8, 64>}]} {
    %c0_i32 = arith.constant 0 : i32
    %0 = arith.cmpi eq, %arg1, %c0_i32 : i32
    %1 = arith.extui %0 : i1 to i32
    %c0_i32_0 = arith.constant 0 : i32
    %2 = arith.cmpi ne, %1, %c0_i32_0 : i32
    scf.if %2 {
      %c0_69 = arith.constant 0 : index
      %c0_70 = arith.constant 0 : index
      %c0_71 = arith.constant 0 : index
      %192 = vector.load %arg2[%c0_69, %c0_70, %c0_71] : memref<1x16x32xf32, #tpu.memory_space<vmem>>, vector<1x16x32xf32>
      %193 = vector.shape_cast %192 : vector<1x16x32xf32> to vector<16x32xf32>
      %194 = arith.truncf %193 : vector<16x32xf32> to vector<16x32xbf16>
      %c0_72 = arith.constant 0 : index
      %c0_73 = arith.constant 0 : index
      %195 = vector.load %arg4[%c0_72, %c0_73] : memref<32x64xbf16, #tpu.memory_space<vmem>>, vector<32x64xbf16>
      %cst_74 = arith.constant dense<0.000000e+00> : vector<16x64xf32>
      %196 = tpu.matmul %194, %195, %cst_74 {dimension_numbers = #tpu.dot_dimension_numbers<[1], [0], [0], [1], [0, 0, 1, 1], [], []>} : vector<16x32xbf16>, vector<32x64xbf16>, vector<16x64xf32> -> vector<16x64xf32>
      %c0_75 = arith.constant 0 : index
      %c0_76 = arith.constant 0 : index
      %197 = vector.load %arg5[%c0_75, %c0_76] : memref<1x64xf32, #tpu.memory_space<vmem>>, vector<1x64xf32>
      %198 = vector.broadcast %197 : vector<1x64xf32> to vector<16x64xf32>
      %199 = arith.addf %196, %198 : vector<16x64xf32>
      %c0_77 = arith.constant 0 : index
      %c0_78 = arith.constant 0 : index
      %200 = vector.load %arg18[%c0_77, %c0_78] : memref<16x64xf32, #tpu.memory_space<vmem>>, vector<16x64xf32>
      tpu.vector_store %arg18[%c0_77, %c0_78], %199 {strides = array<i32>} : memref<16x64xf32, #tpu.memory_space<vmem>>, vector<16x64xf32>,
      %c0_79 = arith.constant 0 : index
      %c0_80 = arith.constant 0 : index
      %c0_81 = arith.constant 0 : index
      %201 = vector.load %arg3[%c0_79, %c0_80, %c0_81] : memref<1x8x64xf32, #tpu.memory_space<vmem>>, vector<1x8x64xf32>
      %202 = vector.shape_cast %201 : vector<1x8x64xf32> to vector<8x64xf32>
      %c0_82 = arith.constant 0 : index
      %c0_83 = arith.constant 0 : index
      %203 = vector.load %arg19[%c0_82, %c0_83] : memref<8x64xf32, #tpu.memory_space<vmem>>, vector<8x64xf32>
      tpu.vector_store %arg19[%c0_82, %c0_83], %202 {strides = array<i32>} : memref<8x64xf32, #tpu.memory_space<vmem>>, vector<8x64xf32>,
    } else {
    }
    %c0 = arith.constant 0 : index
    %c0_1 = arith.constant 0 : index
    %c0_2 = arith.constant 0 : index
    %3 = vector.load %arg6[%c0, %c0_1, %c0_2] : memref<1x8x64xf32, #tpu.memory_space<vmem>>, vector<1x8x64xf32>
    %4 = vector.shape_cast %3 : vector<1x8x64xf32> to vector<8x64xf32>
    %c0_3 = arith.constant 0 : index
    %c0_4 = arith.constant 0 : index
    %5 = vector.load %arg19[%c0_3, %c0_4] : memref<8x64xf32, #tpu.memory_space<vmem>>, vector<8x64xf32>
    %c0_5 = arith.constant 0 : index
    %c0_6 = arith.constant 0 : index
    %6 = vector.load %arg18[%c0_5, %c0_6] : memref<16x64xf32, #tpu.memory_space<vmem>>, vector<16x64xf32>
    %7 = vector.extract_strided_slice %4 {offsets = [0, 0], sizes = [1, 64], strides = [1, 1]} : vector<8x64xf32> to vector<1x64xf32>
    %8 = vector.extract_strided_slice %4 {offsets = [1, 0], sizes = [1, 64], strides = [1, 1]} : vector<8x64xf32> to vector<1x64xf32>
    %cst = arith.constant dense<0.000000e+00> : vector<16xf32>
    %9 = vector.multi_reduction <add>, %6, %cst [1] : vector<16x64xf32> to vector<16xf32>
    %10 = vector.shape_cast %9 : vector<16xf32> to vector<16x1xf32>
    %cst_7 = arith.constant 6.400000e+01 : f32
    %11 = vector.broadcast %cst_7 : f32 to vector<16x1xf32>
    %12 = arith.divf %10, %11 : vector<16x1xf32>
    %13 = vector.broadcast %12 : vector<16x1xf32> to vector<16x64xf32>
    %14 = arith.subf %6, %13 : vector<16x64xf32>
    %15 = arith.mulf %14, %14 : vector<16x64xf32>
    %cst_8 = arith.constant dense<0.000000e+00> : vector<16xf32>
    %16 = vector.multi_reduction <add>, %15, %cst_8 [1] : vector<16x64xf32> to vector<16xf32>
    %17 = vector.shape_cast %16 : vector<16xf32> to vector<16x1xf32>
    %cst_9 = arith.constant 6.400000e+01 : f32
    %18 = vector.broadcast %cst_9 : f32 to vector<16x1xf32>
    %19 = arith.divf %17, %18 : vector<16x1xf32>
    %20 = vector.broadcast %12 : vector<16x1xf32> to vector<16x64xf32>
    %21 = arith.subf %6, %20 : vector<16x64xf32>
    %cst_10 = arith.constant 9.99999974E-6 : f32
    %22 = vector.broadcast %cst_10 : f32 to vector<16x1xf32>
    %23 = arith.addf %19, %22 : vector<16x1xf32>
    %24 = math.rsqrt %23 : vector<16x1xf32>
    %25 = vector.broadcast %24 : vector<16x1xf32> to vector<16x64xf32>
    %26 = arith.mulf %21, %25 : vector<16x64xf32>
    %27 = vector.broadcast %7 : vector<1x64xf32> to vector<16x64xf32>
    %28 = arith.mulf %26, %27 : vector<16x64xf32>
    %29 = vector.broadcast %8 : vector<1x64xf32> to vector<16x64xf32>
    %30 = arith.addf %28, %29 : vector<16x64xf32>
    %31 = vector.extract_strided_slice %4 {offsets = [2, 0], sizes = [1, 64], strides = [1, 1]} : vector<8x64xf32> to vector<1x64xf32>
    %32 = vector.extract_strided_slice %4 {offsets = [3, 0], sizes = [1, 64], strides = [1, 1]} : vector<8x64xf32> to vector<1x64xf32>
    %cst_11 = arith.constant dense<0.000000e+00> : vector<8xf32>
    %33 = vector.multi_reduction <add>, %5, %cst_11 [1] : vector<8x64xf32> to vector<8xf32>
    %34 = vector.shape_cast %33 : vector<8xf32> to vector<8x1xf32>
    %cst_12 = arith.constant 6.400000e+01 : f32
    %35 = vector.broadcast %cst_12 : f32 to vector<8x1xf32>
    %36 = arith.divf %34, %35 : vector<8x1xf32>
    %37 = vector.broadcast %36 : vector<8x1xf32> to vector<8x64xf32>
    %38 = arith.subf %5, %37 : vector<8x64xf32>
    %39 = arith.mulf %38, %38 : vector<8x64xf32>
    %cst_13 = arith.constant dense<0.000000e+00> : vector<8xf32>
    %40 = vector.multi_reduction <add>, %39, %cst_13 [1] : vector<8x64xf32> to vector<8xf32>
    %41 = vector.shape_cast %40 : vector<8xf32> to vector<8x1xf32>
    %cst_14 = arith.constant 6.400000e+01 : f32
    %42 = vector.broadcast %cst_14 : f32 to vector<8x1xf32>
    %43 = arith.divf %41, %42 : vector<8x1xf32>
    %44 = vector.broadcast %36 : vector<8x1xf32> to vector<8x64xf32>
    %45 = arith.subf %5, %44 : vector<8x64xf32>
    %cst_15 = arith.constant 9.99999974E-6 : f32
    %46 = vector.broadcast %cst_15 : f32 to vector<8x1xf32>
    %47 = arith.addf %43, %46 : vector<8x1xf32>
    %48 = math.rsqrt %47 : vector<8x1xf32>
    %49 = vector.broadcast %48 : vector<8x1xf32> to vector<8x64xf32>
    %50 = arith.mulf %45, %49 : vector<8x64xf32>
    %51 = vector.broadcast %31 : vector<1x64xf32> to vector<8x64xf32>
    %52 = arith.mulf %50, %51 : vector<8x64xf32>
    %53 = vector.broadcast %32 : vector<1x64xf32> to vector<8x64xf32>
    %54 = arith.addf %52, %53 : vector<8x64xf32>
    %55 = arith.truncf %54 : vector<8x64xf32> to vector<8x64xbf16>
    %c0_16 = arith.constant 0 : index
    %c0_17 = arith.constant 0 : index
    %c0_18 = arith.constant 0 : index
    %56 = vector.load %arg7[%c0_16, %c0_17, %c0_18] : memref<1x64x64xbf16, #tpu.memory_space<vmem>>, vector<1x64x64xbf16>
    %57 = vector.shape_cast %56 : vector<1x64x64xbf16> to vector<64x64xbf16>
    %cst_19 = arith.constant dense<0.000000e+00> : vector<8x64xf32>
    %58 = tpu.matmul %55, %57, %cst_19 {dimension_numbers = #tpu.dot_dimension_numbers<[1], [0], [0], [1], [0, 0, 1, 1], [], []>} : vector<8x64xbf16>, vector<64x64xbf16>, vector<8x64xf32> -> vector<8x64xf32>
    %cst_20 = arith.constant 2.500000e-01 : f32
    %59 = vector.broadcast %cst_20 : f32 to vector<8x64xf32>
    %60 = arith.mulf %58, %59 : vector<8x64xf32>
    %61 = arith.truncf %60 : vector<8x64xf32> to vector<8x64xbf16>
    %62 = tpu.concatenate %30, %54 in 0 : vector<16x64xf32>, vector<8x64xf32> -> vector<24x64xf32>
    %63 = arith.truncf %62 : vector<24x64xf32> to vector<24x64xbf16>
    %c0_21 = arith.constant 0 : index
    %c0_22 = arith.constant 0 : index
    %c0_23 = arith.constant 0 : index
    %64 = vector.load %arg8[%c0_21, %c0_22, %c0_23] : memref<1x64x64xbf16, #tpu.memory_space<vmem>>, vector<1x64x64xbf16>
    %65 = vector.shape_cast %64 : vector<1x64x64xbf16> to vector<64x64xbf16>
    %cst_24 = arith.constant dense<0.000000e+00> : vector<24x64xf32>
    %66 = tpu.matmul %63, %65, %cst_24 {dimension_numbers = #tpu.dot_dimension_numbers<[1], [0], [0], [1], [0, 0, 1, 1], [], []>} : vector<24x64xbf16>, vector<64x64xbf16>, vector<24x64xf32> -> vector<24x64xf32>
    %67 = arith.truncf %66 : vector<24x64xf32> to vector<24x64xbf16>
    %c0_25 = arith.constant 0 : index
    %c0_26 = arith.constant 0 : index
    %c0_27 = arith.constant 0 : index
    %68 = vector.load %arg9[%c0_25, %c0_26, %c0_27] : memref<1x64x64xbf16, #tpu.memory_space<vmem>>, vector<1x64x64xbf16>
    %69 = vector.shape_cast %68 : vector<1x64x64xbf16> to vector<64x64xbf16>
    %cst_28 = arith.constant dense<0.000000e+00> : vector<24x64xf32>
    %70 = tpu.matmul %63, %69, %cst_28 {dimension_numbers = #tpu.dot_dimension_numbers<[1], [0], [0], [1], [0, 0, 1, 1], [], []>} : vector<24x64xbf16>, vector<64x64xbf16>, vector<24x64xf32> -> vector<24x64xf32>
    %71 = arith.truncf %70 : vector<24x64xf32> to vector<24x64xbf16>
    %72 = vector.extract_strided_slice %61 {offsets = [0, 0], sizes = [8, 16], strides = [1, 1]} : vector<8x64xbf16> to vector<8x16xbf16>
    %73 = vector.extract_strided_slice %67 {offsets = [0, 0], sizes = [24, 16], strides = [1, 1]} : vector<24x64xbf16> to vector<24x16xbf16>
    %cst_29 = arith.constant dense<0.000000e+00> : vector<8x24xf32>
    %74 = tpu.matmul %72, %73, %cst_29 {dimension_numbers = #tpu.dot_dimension_numbers<[1], [1], [0], [0], [0, 0, 1, 0], [], []>} : vector<8x16xbf16>, vector<24x16xbf16>, vector<8x24xf32> -> vector<8x24xf32>
    %cst_30 = arith.constant dense<0xFF800000> : vector<8xf32>
    %75 = vector.multi_reduction <maximumf>, %74, %cst_30 [1] : vector<8x24xf32> to vector<8xf32>
    %76 = vector.shape_cast %75 : vector<8xf32> to vector<8x1xf32>
    %77 = vector.broadcast %76 : vector<8x1xf32> to vector<8x24xf32>
    %78 = arith.subf %74, %77 : vector<8x24xf32>
    %79 = math.exp %78 : vector<8x24xf32>
    %cst_31 = arith.constant dense<0.000000e+00> : vector<8xf32>
    %80 = vector.multi_reduction <add>, %79, %cst_31 [1] : vector<8x24xf32> to vector<8xf32>
    %81 = vector.shape_cast %80 : vector<8xf32> to vector<8x1xf32>
    %82 = tpu.reciprocal %81 {approx = true} : vector<8x1xf32> -> vector<8x1xf32>
    %83 = vector.broadcast %82 : vector<8x1xf32> to vector<8x24xf32>
    %84 = arith.mulf %79, %83 : vector<8x24xf32>
    %85 = arith.truncf %84 : vector<8x24xf32> to vector<8x24xbf16>
    %86 = vector.extract_strided_slice %71 {offsets = [0, 0], sizes = [24, 16], strides = [1, 1]} : vector<24x64xbf16> to vector<24x16xbf16>
    %cst_32 = arith.constant dense<0.000000e+00> : vector<8x16xf32>
    %87 = tpu.matmul %85, %86, %cst_32 {dimension_numbers = #tpu.dot_dimension_numbers<[1], [0], [0], [1], [0, 0, 1, 1], [], []>} : vector<8x24xbf16>, vector<24x16xbf16>, vector<8x16xf32> -> vector<8x16xf32>
    %88 = vector.extract_strided_slice %61 {offsets = [0, 16], sizes = [8, 16], strides = [1, 1]} : vector<8x64xbf16> to vector<8x16xbf16>
    %89 = vector.extract_strided_slice %67 {offsets = [0, 16], sizes = [24, 16], strides = [1, 1]} : vector<24x64xbf16> to vector<24x16xbf16>
    %cst_33 = arith.constant dense<0.000000e+00> : vector<8x24xf32>
    %90 = tpu.matmul %88, %89, %cst_33 {dimension_numbers = #tpu.dot_dimension_numbers<[1], [1], [0], [0], [0, 0, 1, 0], [], []>} : vector<8x16xbf16>, vector<24x16xbf16>, vector<8x24xf32> -> vector<8x24xf32>
    %cst_34 = arith.constant dense<0xFF800000> : vector<8xf32>
    %91 = vector.multi_reduction <maximumf>, %90, %cst_34 [1] : vector<8x24xf32> to vector<8xf32>
    %92 = vector.shape_cast %91 : vector<8xf32> to vector<8x1xf32>
    %93 = vector.broadcast %92 : vector<8x1xf32> to vector<8x24xf32>
    %94 = arith.subf %90, %93 : vector<8x24xf32>
    %95 = math.exp %94 : vector<8x24xf32>
    %cst_35 = arith.constant dense<0.000000e+00> : vector<8xf32>
    %96 = vector.multi_reduction <add>, %95, %cst_35 [1] : vector<8x24xf32> to vector<8xf32>
    %97 = vector.shape_cast %96 : vector<8xf32> to vector<8x1xf32>
    %98 = tpu.reciprocal %97 {approx = true} : vector<8x1xf32> -> vector<8x1xf32>
    %99 = vector.broadcast %98 : vector<8x1xf32> to vector<8x24xf32>
    %100 = arith.mulf %95, %99 : vector<8x24xf32>
    %101 = arith.truncf %100 : vector<8x24xf32> to vector<8x24xbf16>
    %102 = vector.extract_strided_slice %71 {offsets = [0, 16], sizes = [24, 16], strides = [1, 1]} : vector<24x64xbf16> to vector<24x16xbf16>
    %cst_36 = arith.constant dense<0.000000e+00> : vector<8x16xf32>
    %103 = tpu.matmul %101, %102, %cst_36 {dimension_numbers = #tpu.dot_dimension_numbers<[1], [0], [0], [1], [0, 0, 1, 1], [], []>} : vector<8x24xbf16>, vector<24x16xbf16>, vector<8x16xf32> -> vector<8x16xf32>
    %104 = vector.extract_strided_slice %61 {offsets = [0, 32], sizes = [8, 16], strides = [1, 1]} : vector<8x64xbf16> to vector<8x16xbf16>
    %105 = vector.extract_strided_slice %67 {offsets = [0, 32], sizes = [24, 16], strides = [1, 1]} : vector<24x64xbf16> to vector<24x16xbf16>
    %cst_37 = arith.constant dense<0.000000e+00> : vector<8x24xf32>
    %106 = tpu.matmul %104, %105, %cst_37 {dimension_numbers = #tpu.dot_dimension_numbers<[1], [1], [0], [0], [0, 0, 1, 0], [], []>} : vector<8x16xbf16>, vector<24x16xbf16>, vector<8x24xf32> -> vector<8x24xf32>
    %cst_38 = arith.constant dense<0xFF800000> : vector<8xf32>
    %107 = vector.multi_reduction <maximumf>, %106, %cst_38 [1] : vector<8x24xf32> to vector<8xf32>
    %108 = vector.shape_cast %107 : vector<8xf32> to vector<8x1xf32>
    %109 = vector.broadcast %108 : vector<8x1xf32> to vector<8x24xf32>
    %110 = arith.subf %106, %109 : vector<8x24xf32>
    %111 = math.exp %110 : vector<8x24xf32>
    %cst_39 = arith.constant dense<0.000000e+00> : vector<8xf32>
    %112 = vector.multi_reduction <add>, %111, %cst_39 [1] : vector<8x24xf32> to vector<8xf32>
    %113 = vector.shape_cast %112 : vector<8xf32> to vector<8x1xf32>
    %114 = tpu.reciprocal %113 {approx = true} : vector<8x1xf32> -> vector<8x1xf32>
    %115 = vector.broadcast %114 : vector<8x1xf32> to vector<8x24xf32>
    %116 = arith.mulf %111, %115 : vector<8x24xf32>
    %117 = arith.truncf %116 : vector<8x24xf32> to vector<8x24xbf16>
    %118 = vector.extract_strided_slice %71 {offsets = [0, 32], sizes = [24, 16], strides = [1, 1]} : vector<24x64xbf16> to vector<24x16xbf16>
    %cst_40 = arith.constant dense<0.000000e+00> : vector<8x16xf32>
    %119 = tpu.matmul %117, %118, %cst_40 {dimension_numbers = #tpu.dot_dimension_numbers<[1], [0], [0], [1], [0, 0, 1, 1], [], []>} : vector<8x24xbf16>, vector<24x16xbf16>, vector<8x16xf32> -> vector<8x16xf32>
    %120 = vector.extract_strided_slice %61 {offsets = [0, 48], sizes = [8, 16], strides = [1, 1]} : vector<8x64xbf16> to vector<8x16xbf16>
    %121 = vector.extract_strided_slice %67 {offsets = [0, 48], sizes = [24, 16], strides = [1, 1]} : vector<24x64xbf16> to vector<24x16xbf16>
    %cst_41 = arith.constant dense<0.000000e+00> : vector<8x24xf32>
    %122 = tpu.matmul %120, %121, %cst_41 {dimension_numbers = #tpu.dot_dimension_numbers<[1], [1], [0], [0], [0, 0, 1, 0], [], []>} : vector<8x16xbf16>, vector<24x16xbf16>, vector<8x24xf32> -> vector<8x24xf32>
    %cst_42 = arith.constant dense<0xFF800000> : vector<8xf32>
    %123 = vector.multi_reduction <maximumf>, %122, %cst_42 [1] : vector<8x24xf32> to vector<8xf32>
    %124 = vector.shape_cast %123 : vector<8xf32> to vector<8x1xf32>
    %125 = vector.broadcast %124 : vector<8x1xf32> to vector<8x24xf32>
    %126 = arith.subf %122, %125 : vector<8x24xf32>
    %127 = math.exp %126 : vector<8x24xf32>
    %cst_43 = arith.constant dense<0.000000e+00> : vector<8xf32>
    %128 = vector.multi_reduction <add>, %127, %cst_43 [1] : vector<8x24xf32> to vector<8xf32>
    %129 = vector.shape_cast %128 : vector<8xf32> to vector<8x1xf32>
    %130 = tpu.reciprocal %129 {approx = true} : vector<8x1xf32> -> vector<8x1xf32>
    %131 = vector.broadcast %130 : vector<8x1xf32> to vector<8x24xf32>
    %132 = arith.mulf %127, %131 : vector<8x24xf32>
    %133 = arith.truncf %132 : vector<8x24xf32> to vector<8x24xbf16>
    %134 = vector.extract_strided_slice %71 {offsets = [0, 48], sizes = [24, 16], strides = [1, 1]} : vector<24x64xbf16> to vector<24x16xbf16>
    %cst_44 = arith.constant dense<0.000000e+00> : vector<8x16xf32>
    %135 = tpu.matmul %133, %134, %cst_44 {dimension_numbers = #tpu.dot_dimension_numbers<[1], [0], [0], [1], [0, 0, 1, 1], [], []>} : vector<8x24xbf16>, vector<24x16xbf16>, vector<8x16xf32> -> vector<8x16xf32>
    %136 = tpu.concatenate %87, %103, %119, %135 in 1 : vector<8x16xf32>, vector<8x16xf32>, vector<8x16xf32>, vector<8x16xf32> -> vector<8x64xf32>
    %137 = arith.truncf %136 : vector<8x64xf32> to vector<8x64xbf16>
    %c0_45 = arith.constant 0 : index
    %c0_46 = arith.constant 0 : index
    %c0_47 = arith.constant 0 : index
    %138 = vector.load %arg10[%c0_45, %c0_46, %c0_47] : memref<1x64x64xbf16, #tpu.memory_space<vmem>>, vector<1x64x64xbf16>
    %139 = vector.shape_cast %138 : vector<1x64x64xbf16> to vector<64x64xbf16>
    %cst_48 = arith.constant dense<0.000000e+00> : vector<8x64xf32>
    %140 = tpu.matmul %137, %139, %cst_48 {dimension_numbers = #tpu.dot_dimension_numbers<[1], [0], [0], [1], [0, 0, 1, 1], [], []>} : vector<8x64xbf16>, vector<64x64xbf16>, vector<8x64xf32> -> vector<8x64xf32>
    %141 = arith.addf %5, %140 : vector<8x64xf32>
    %142 = vector.extract_strided_slice %4 {offsets = [4, 0], sizes = [1, 64], strides = [1, 1]} : vector<8x64xf32> to vector<1x64xf32>
    %143 = vector.extract_strided_slice %4 {offsets = [5, 0], sizes = [1, 64], strides = [1, 1]} : vector<8x64xf32> to vector<1x64xf32>
    %cst_49 = arith.constant dense<0.000000e+00> : vector<8xf32>
    %144 = vector.multi_reduction <add>, %141, %cst_49 [1] : vector<8x64xf32> to vector<8xf32>
    %145 = vector.shape_cast %144 : vector<8xf32> to vector<8x1xf32>
    %cst_50 = arith.constant 6.400000e+01 : f32
    %146 = vector.broadcast %cst_50 : f32 to vector<8x1xf32>
    %147 = arith.divf %145, %146 : vector<8x1xf32>
    %148 = vector.broadcast %147 : vector<8x1xf32> to vector<8x64xf32>
    %149 = arith.subf %141, %148 : vector<8x64xf32>
    %150 = arith.mulf %149, %149 : vector<8x64xf32>
    %cst_51 = arith.constant dense<0.000000e+00> : vector<8xf32>
    %151 = vector.multi_reduction <add>, %150, %cst_51 [1] : vector<8x64xf32> to vector<8xf32>
    %152 = vector.shape_cast %151 : vector<8xf32> to vector<8x1xf32>
    %cst_52 = arith.constant 6.400000e+01 : f32
    %153 = vector.broadcast %cst_52 : f32 to vector<8x1xf32>
    %154 = arith.divf %152, %153 : vector<8x1xf32>
    %155 = vector.broadcast %147 : vector<8x1xf32> to vector<8x64xf32>
    %156 = arith.subf %141, %155 : vector<8x64xf32>
    %cst_53 = arith.constant 9.99999974E-6 : f32
    %157 = vector.broadcast %cst_53 : f32 to vector<8x1xf32>
    %158 = arith.addf %154, %157 : vector<8x1xf32>
    %159 = math.rsqrt %158 : vector<8x1xf32>
    %160 = vector.broadcast %159 : vector<8x1xf32> to vector<8x64xf32>
    %161 = arith.mulf %156, %160 : vector<8x64xf32>
    %162 = vector.broadcast %142 : vector<1x64xf32> to vector<8x64xf32>
    %163 = arith.mulf %161, %162 : vector<8x64xf32>
    %164 = vector.broadcast %143 : vector<1x64xf32> to vector<8x64xf32>
    %165 = arith.addf %163, %164 : vector<8x64xf32>
    %166 = arith.truncf %165 : vector<8x64xf32> to vector<8x64xbf16>
    %c0_54 = arith.constant 0 : index
    %c0_55 = arith.constant 0 : index
    %c0_56 = arith.constant 0 : index
    %167 = vector.load %arg11[%c0_54, %c0_55, %c0_56] : memref<1x64x256xbf16, #tpu.memory_space<vmem>>, vector<1x64x256xbf16>
    %168 = vector.shape_cast %167 : vector<1x64x256xbf16> to vector<64x256xbf16>
    %cst_57 = arith.constant dense<0.000000e+00> : vector<8x256xf32>
    %169 = tpu.matmul %166, %168, %cst_57 {dimension_numbers = #tpu.dot_dimension_numbers<[1], [0], [0], [1], [0, 0, 1, 1], [], []>} : vector<8x64xbf16>, vector<64x256xbf16>, vector<8x256xf32> -> vector<8x256xf32>
    %cst_58 = arith.constant 5.000000e-01 : f32
    %170 = vector.broadcast %cst_58 : f32 to vector<8x256xf32>
    %171 = arith.mulf %170, %169 : vector<8x256xf32>
    %cst_59 = arith.constant 4.471500e-02 : f32
    %172 = vector.broadcast %cst_59 : f32 to vector<8x256xf32>
    %173 = arith.mulf %172, %169 : vector<8x256xf32>
    %174 = arith.mulf %173, %169 : vector<8x256xf32>
    %175 = arith.mulf %174, %169 : vector<8x256xf32>
    %176 = arith.addf %169, %175 : vector<8x256xf32>
    %cst_60 = arith.constant 0.797884583 : f32
    %177 = vector.broadcast %cst_60 : f32 to vector<8x256xf32>
    %178 = arith.mulf %177, %176 : vector<8x256xf32>
    %179 = math.tanh %178 : vector<8x256xf32>
    %cst_61 = arith.constant 1.000000e+00 : f32
    %180 = vector.broadcast %cst_61 : f32 to vector<8x256xf32>
    %181 = arith.addf %180, %179 : vector<8x256xf32>
    %182 = arith.mulf %171, %181 : vector<8x256xf32>
    %183 = arith.truncf %182 : vector<8x256xf32> to vector<8x256xbf16>
    %c0_62 = arith.constant 0 : index
    %c0_63 = arith.constant 0 : index
    %c0_64 = arith.constant 0 : index
    %184 = vector.load %arg12[%c0_62, %c0_63, %c0_64] : memref<1x256x64xbf16, #tpu.memory_space<vmem>>, vector<1x256x64xbf16>
    %185 = vector.shape_cast %184 : vector<1x256x64xbf16> to vector<256x64xbf16>
    %cst_65 = arith.constant dense<0.000000e+00> : vector<8x64xf32>
    %186 = tpu.matmul %183, %185, %cst_65 {dimension_numbers = #tpu.dot_dimension_numbers<[1], [0], [0], [1], [0, 0, 1, 1], [], []>} : vector<8x256xbf16>, vector<256x64xbf16>, vector<8x64xf32> -> vector<8x64xf32>
    %187 = arith.addf %141, %186 : vector<8x64xf32>
    %c0_66 = arith.constant 0 : index
    %c0_67 = arith.constant 0 : index
    %188 = vector.load %arg19[%c0_66, %c0_67] : memref<8x64xf32, #tpu.memory_space<vmem>>, vector<8x64xf32>
    tpu.vector_store %arg19[%c0_66, %c0_67], %187 {strides = array<i32>} : memref<8x64xf32, #tpu.memory_space<vmem>>, vector<8x64xf32>,
    %c1_i32 = arith.constant 1 : i32
    %189 = arith.cmpi eq, %arg1, %c1_i32 : i32
    %190 = arith.extui %189 : i1 to i32
    %c0_i32_68 = arith.constant 0 : i32
    %191 = arith.cmpi ne, %190, %c0_i32_68 : i32
    scf.if %191 {
      %192 = arith.truncf %187 : vector<8x64xf32> to vector<8x64xbf16>
      %c0_69 = arith.constant 0 : index
      %c0_70 = arith.constant 0 : index
      %193 = vector.load %arg13[%c0_69, %c0_70] : memref<64x64xbf16, #tpu.memory_space<vmem>>, vector<64x64xbf16>
      %cst_71 = arith.constant dense<0.000000e+00> : vector<8x64xf32>
      %194 = tpu.matmul %192, %193, %cst_71 {dimension_numbers = #tpu.dot_dimension_numbers<[1], [0], [0], [1], [0, 0, 1, 1], [], []>} : vector<8x64xbf16>, vector<64x64xbf16>, vector<8x64xf32> -> vector<8x64xf32>
      %c0_72 = arith.constant 0 : index
      %c0_73 = arith.constant 0 : index
      %195 = vector.load %arg14[%c0_72, %c0_73] : memref<1x64xf32, #tpu.memory_space<vmem>>, vector<1x64xf32>
      %196 = vector.broadcast %195 : vector<1x64xf32> to vector<8x64xf32>
      %197 = arith.addf %194, %196 : vector<8x64xf32>
      %c0_74 = arith.constant 0 : index
      %c0_75 = arith.constant 0 : index
      %198 = vector.load %arg15[%c0_74, %c0_75] : memref<1x64xf32, #tpu.memory_space<vmem>>, vector<1x64xf32>
      %c0_76 = arith.constant 0 : index
      %c0_77 = arith.constant 0 : index
      %199 = vector.load %arg16[%c0_76, %c0_77] : memref<1x64xf32, #tpu.memory_space<vmem>>, vector<1x64xf32>
      %cst_78 = arith.constant dense<0.000000e+00> : vector<8xf32>
      %200 = vector.multi_reduction <add>, %197, %cst_78 [1] : vector<8x64xf32> to vector<8xf32>
      %201 = vector.shape_cast %200 : vector<8xf32> to vector<8x1xf32>
      %cst_79 = arith.constant 6.400000e+01 : f32
      %202 = vector.broadcast %cst_79 : f32 to vector<8x1xf32>
      %203 = arith.divf %201, %202 : vector<8x1xf32>
      %204 = vector.broadcast %203 : vector<8x1xf32> to vector<8x64xf32>
      %205 = arith.subf %197, %204 : vector<8x64xf32>
      %206 = arith.mulf %205, %205 : vector<8x64xf32>
      %cst_80 = arith.constant dense<0.000000e+00> : vector<8xf32>
      %207 = vector.multi_reduction <add>, %206, %cst_80 [1] : vector<8x64xf32> to vector<8xf32>
      %208 = vector.shape_cast %207 : vector<8xf32> to vector<8x1xf32>
      %cst_81 = arith.constant 6.400000e+01 : f32
      %209 = vector.broadcast %cst_81 : f32 to vector<8x1xf32>
      %210 = arith.divf %208, %209 : vector<8x1xf32>
      %211 = vector.broadcast %203 : vector<8x1xf32> to vector<8x64xf32>
      %212 = arith.subf %197, %211 : vector<8x64xf32>
      %cst_82 = arith.constant 9.99999974E-6 : f32
      %213 = vector.broadcast %cst_82 : f32 to vector<8x1xf32>
      %214 = arith.addf %210, %213 : vector<8x1xf32>
      %215 = math.rsqrt %214 : vector<8x1xf32>
      %216 = vector.broadcast %215 : vector<8x1xf32> to vector<8x64xf32>
      %217 = arith.mulf %212, %216 : vector<8x64xf32>
      %218 = vector.broadcast %198 : vector<1x64xf32> to vector<8x64xf32>
      %219 = arith.mulf %217, %218 : vector<8x64xf32>
      %220 = vector.broadcast %199 : vector<1x64xf32> to vector<8x64xf32>
      %221 = arith.addf %219, %220 : vector<8x64xf32>
      %c0_83 = arith.constant 0 : index
      %c0_84 = arith.constant 0 : index
      %c0_85 = arith.constant 0 : index
      %222 = vector.load %arg17[%c0_83, %c0_84, %c0_85] : memref<1x8x64xf32, #tpu.memory_space<vmem>>, vector<1x8x64xf32>
      %223 = vector.shape_cast %222 : vector<1x8x64xf32> to vector<8x64xf32>
      %224 = vector.shape_cast %221 : vector<8x64xf32> to vector<1x8x64xf32>
      tpu.vector_store %arg17[%c0_83, %c0_84, %c0_85], %224 {strides = array<i32>} : memref<1x8x64xf32, #tpu.memory_space<vmem>>, vector<1x8x64xf32>,
    } else {
    }
    return
  }
  func.func @transform_0(%arg0: i32, %arg1: i32) -> (i32, i32, i32) {
    %c0_i32 = arith.constant 0 : i32
    %c0_i32_0 = arith.constant 0 : i32
    %c0_i32_1 = arith.constant 0 : i32
    return %arg0, %c0_i32, %c0_i32_0 : i32, i32, i32
  }
  func.func @transform_1(%arg0: i32, %arg1: i32) -> (i32, i32, i32) {
    %c0_i32 = arith.constant 0 : i32
    %c0_i32_0 = arith.constant 0 : i32
    %c0_i32_1 = arith.constant 0 : i32
    %c0_i32_2 = arith.constant 0 : i32
    return %c0_i32, %c0_i32_0, %c0_i32_1 : i32, i32, i32
  }
  func.func @transform_2(%arg0: i32, %arg1: i32) -> (i32, i32) {
    %c0_i32 = arith.constant 0 : i32
    %c0_i32_0 = arith.constant 0 : i32
    %c0_i32_1 = arith.constant 0 : i32
    return %c0_i32, %c0_i32_0 : i32, i32
  }
  func.func @transform_3(%arg0: i32, %arg1: i32) -> (i32, i32) {
    %c0_i32 = arith.constant 0 : i32
    %c0_i32_0 = arith.constant 0 : i32
    %c0_i32_1 = arith.constant 0 : i32
    return %c0_i32, %c0_i32_0 : i32, i32
  }
  func.func @transform_4(%arg0: i32, %arg1: i32) -> (i32, i32, i32) {
    %c0_i32 = arith.constant 0 : i32
    %c0_i32_0 = arith.constant 0 : i32
    %c0_i32_1 = arith.constant 0 : i32
    return %arg1, %c0_i32, %c0_i32_0 : i32, i32, i32
  }
  func.func @transform_5(%arg0: i32, %arg1: i32) -> (i32, i32, i32) {
    %c0_i32 = arith.constant 0 : i32
    %c0_i32_0 = arith.constant 0 : i32
    %c0_i32_1 = arith.constant 0 : i32
    return %arg1, %c0_i32, %c0_i32_0 : i32, i32, i32
  }
  func.func @transform_6(%arg0: i32, %arg1: i32) -> (i32, i32, i32) {
    %c0_i32 = arith.constant 0 : i32
    %c0_i32_0 = arith.constant 0 : i32
    %c0_i32_1 = arith.constant 0 : i32
    return %arg1, %c0_i32, %c0_i32_0 : i32, i32, i32
  }
  func.func @transform_7(%arg0: i32, %arg1: i32) -> (i32, i32, i32) {
    %c0_i32 = arith.constant 0 : i32
    %c0_i32_0 = arith.constant 0 : i32
    %c0_i32_1 = arith.constant 0 : i32
    return %arg1, %c0_i32, %c0_i32_0 : i32, i32, i32
  }
  func.func @transform_8(%arg0: i32, %arg1: i32) -> (i32, i32, i32) {
    %c0_i32 = arith.constant 0 : i32
    %c0_i32_0 = arith.constant 0 : i32
    %c0_i32_1 = arith.constant 0 : i32
    return %arg1, %c0_i32, %c0_i32_0 : i32, i32, i32
  }
  func.func @transform_9(%arg0: i32, %arg1: i32) -> (i32, i32, i32) {
    %c0_i32 = arith.constant 0 : i32
    %c0_i32_0 = arith.constant 0 : i32
    %c0_i32_1 = arith.constant 0 : i32
    return %arg1, %c0_i32, %c0_i32_0 : i32, i32, i32
  }
  func.func @transform_10(%arg0: i32, %arg1: i32) -> (i32, i32, i32) {
    %c0_i32 = arith.constant 0 : i32
    %c0_i32_0 = arith.constant 0 : i32
    %c0_i32_1 = arith.constant 0 : i32
    return %arg1, %c0_i32, %c0_i32_0 : i32, i32, i32
  }
  func.func @transform_11(%arg0: i32, %arg1: i32) -> (i32, i32) {
    %c0_i32 = arith.constant 0 : i32
    %c0_i32_0 = arith.constant 0 : i32
    %c0_i32_1 = arith.constant 0 : i32
    return %c0_i32, %c0_i32_0 : i32, i32
  }
  func.func @transform_12(%arg0: i32, %arg1: i32) -> (i32, i32) {
    %c0_i32 = arith.constant 0 : i32
    %c0_i32_0 = arith.constant 0 : i32
    %c0_i32_1 = arith.constant 0 : i32
    return %c0_i32, %c0_i32_0 : i32, i32
  }
  func.func @transform_13(%arg0: i32, %arg1: i32) -> (i32, i32) {
    %c0_i32 = arith.constant 0 : i32
    %c0_i32_0 = arith.constant 0 : i32
    %c0_i32_1 = arith.constant 0 : i32
    return %c0_i32, %c0_i32_0 : i32, i32
  }
  func.func @transform_14(%arg0: i32, %arg1: i32) -> (i32, i32) {
    %c0_i32 = arith.constant 0 : i32
    %c0_i32_0 = arith.constant 0 : i32
    %c0_i32_1 = arith.constant 0 : i32
    return %c0_i32, %c0_i32_0 : i32, i32
  }
  func.func @transform_15(%arg0: i32, %arg1: i32) -> (i32, i32, i32) {
    %c0_i32 = arith.constant 0 : i32
    %c0_i32_0 = arith.constant 0 : i32
    %c0_i32_1 = arith.constant 0 : i32
    return %arg0, %c0_i32, %c0_i32_0 : i32, i32, i32
  }
}

</mosaic_0001>

<bundles_post_ra>
// kernel: resampler_forward.1
= control target key start
LH: loop header
LB: loop body
LE: loop exit
PB: predicated region body
PF: predicated region fallthrough
CT: control target
= control target key end

     0   :  { %s3285_s0 = inlined_call_operand.vmem [shape: f32[2,16,32], index: 0, kind: input, shape index: {}]   ;;  %s3286_s1 = inlined_call_operand.vmem [shape: f32[1,8,64], index: 1, kind: input, shape index: {}]   ;;  %s3287_s2 = inlined_call_operand.vmem [shape: bf16[32,64], index: 2, kind: input, shape index: {}]   ;;  %s3288_s3 = inlined_call_operand.vmem [shape: f32[1,64], index: 3, kind: input, shape index: {}]   ;;  %s3289_s4 = inlined_call_operand.vmem [shape: f32[2,8,64], index: 4, kind: input, shape index: {}]   ;;  %s3290_s5 = inlined_call_operand.vmem [shape: bf16[2,64,64], index: 5, kind: input, shape index: {}]   ;;  %s3291_s6 = inlined_call_operand.vmem [shape: bf16[2,64,64], index: 6, kind: input, shape index: {}]   ;;  %s3292_s7 = inlined_call_operand.vmem [shape: bf16[2,64,64], index: 7, kind: input, shape index: {}]   ;;  %s3293_s8 = inlined_call_operand.vmem [shape: bf16[2,64,64], index: 8, kind: input, shape index: {}]   ;;  %s3294_s9 = inlined_call_operand.vmem [shape: bf16[2,64,256], index: 9, kind: input, shape index: {}]   ;;  %s3295_s10 = inlined_call_operand.vmem [shape: bf16[2,256,64], index: 10, kind: input, shape index: {}]   ;;  %s3296_s11 = inlined_call_operand.vmem [shape: bf16[64,64], index: 11, kind: input, shape index: {}]   ;;  %s3297_s12 = inlined_call_operand.vmem [shape: f32[1,64], index: 12, kind: input, shape index: {}]   ;;  %s3298_s13 = inlined_call_operand.vmem [shape: f32[1,64], index: 13, kind: input, shape index: {}]   ;;  %s3299_s14 = inlined_call_operand.vmem [shape: f32[1,64], index: 14, kind: input, shape index: {}]   ;;  %s3300_s15 = inlined_call_operand.hbm [shape: f32[2,8,64], index: 15, kind: output, shape index: {}]  }
   0x1   :  { %3315 = sst [smem:[#allocation19_spill]] %s3285_s0 }
   0x2   :  { %3316 = sst [smem:[#allocation20_spill]] %s3289_s4 }
   0x3   :  { %3317 = sst [smem:[#allocation21_spill]] %s3290_s5 }
   0x4   :  { %3318 = sst [smem:[#allocation22_spill]] %s3297_s12 }
   0x5   :  { %3319 = sst [smem:[#allocation23_spill]] %s3298_s13 }
   0x6   :  { %3320 = sst [smem:[#allocation24_spill]] %s3299_s14 }
   0x7   :  { %3321 = sst [smem:[#allocation25_spill]] %s3300_s15 }
   0x8   :  { %20 = vsyncpa [#allocation5], 0 }
   0x9   :  { %22 = vsyncpa [#allocation5 + $0x1], 0  ;;  %s2853_s18 = smov 0   ;;  %s2855_s19 = smov 0  }
   0xa   :  { %s2857_s20 = smov 0   ;;  %s2859_s21 = smov 0  }
   0xb   :  { %s2861_s22 = smov 0   ;;  %s2863_s23 = smov 0  }
   0xc   :  { %s2865_s24 = smov 0   ;;  %s2867_s25 = smov 0  }
   0xd LB: > { %3322 = sst [smem:[#allocation7_spill]] %s2729_s18  ;;  %s2190_s26 = sadd.s32 4294967295, %s2757_s25   ;;  %s2757_s25 = sphi %s2867_s25, %s28_s25   ;;  %s2753_s24 = sphi %s2865_s24, %s3356_s24   ;;  %s2749_s23 = sphi %s2863_s23, %s3355_s23   ;;  %s2745_s22 = sphi %s2861_s22, %s3354_s22   ;;  %s2741_s21 = sphi %s2859_s21, %s3353_s21   ;;  %s2737_s20 = sphi %s2857_s20, %s3352_s20   ;;  %s2733_s19 = sphi %s2855_s19, %s3351_s19   ;;  %s2729_s18 = sphi %s2853_s18, %s3350_s18  }
   0xe   : > { %3323 = sst [smem:[#allocation8_spill]] %s2733_s19  ;;  %s2191_s27 = sadd.s32 4294967294, %s2757_s25  }
   0xf   : > { %3324 = sst [smem:[#allocation9_spill]] %s2737_s20  ;;  %s37_s28 = sadd.s32 1, %s2749_s23 }
  0x10   : > { %3325 = sst [smem:[#allocation10_spill]] %s2745_s22  ;;  %p38_p0 = scmp.ge.s32.totalorder %s37_s28, 2 }
  0x11   : > { %3326 = sst [smem:[#allocation11_spill]] %s2749_s23  ;;  %s40_s29 = sadd.s32 1, %s2753_s24 }
  0x12   : > { %3327 = sst [smem:[#allocation12_spill]] %s2753_s24  ;;  %p412_p1 = scmp.ne.s32.totalorder %s2737_s20, %s2733_s19 }
  0x13   : > { %3328 = sst [smem:[#allocation13_spill]] %s2757_s25  ;;  %p413_p2 = scmp.eq.s32.totalorder %s2190_s26, 3 }
  0x14   : > { %s3358_s28 = smov (%p38_p0, %s37_s28), 0  ;;  %s3360_s29 = smov (!%p38_p0, %s40_s29), %s2753_s24 }
  0x15   : > { %3329 = sst [smem:[#allocation14_spill]] %s3358_s28  ;;  %p2902_p3 = por %p413_p2, %p412_p1 }
  0x16   : > { %p418_p4 = scmp.ne.s32.totalorder %s2733_s19, %s2729_s18  ;;  %p42_p5 = scmp.ge.s32.totalorder %s3360_s29, 2 }
  0x17   : > { %s3330_s30 = scalar_select %p2902_p3, 1, 0 }
  0x18   : > { %p419_p6 = scmp.eq.s32.totalorder %s2191_s27, 3  ;;  %p2194_p7 = scmp.ge.s32.totalorder %s2757_s25, 1 }
  0x19   : > { %3331 = sst [smem:[#allocation15_spill]] %s3330_s30  ;;  %p521_p8 = scmp.lt.s32.totalorder %s2757_s25, 5 }
  0x1a   : > { %s3362_s29 = smov (%p42_p5, %s3360_s29), 0  ;;  %p2912_p9 = por %p419_p6, %p418_p4 }
  0x1b   : > { %3332 = sst [smem:[#allocation16_spill]] %s3362_s29  ;;  %p522_p10 = pnand %p2194_p7, %p521_p8 }
  0x1c   : > { %s3333_s16 = scalar_select %p2912_p9, 1, 0 }
  0x1d   : > { %s399_s17 = ssub.s32 %s2753_s24, %s3362_s29  ;;  %s402_s26 = sadd.s32 1, %s2737_s20 }
  0x1e   : > { %3334 = sst [smem:[#allocation17_spill]] %s3333_s16  ;;  %p400_p11 = scmp.eq.s32.totalorder %s399_s17, 0 }
  0x1f   : > { %525 = sbr.rel (%p522_p10) target bundleno = 4441 (0x1159), region = 80  ;;  %s3313_s27 = sand.u32 (!%p522_p10), 1, %s2733_s19  }
  0x20   : > { %s2920_s28 = scalar_select %p400_p11, %s2737_s20, %s402_s26  }
  0x21   : > { %p603_p12 = scmp.lt.s32.totalorder (!%p522_p10), %s2745_s22, 1  ;;  %s2926_s23 = sshll.u32 (!%p522_p10), %s3313_s27, 3 }
  0x22   : > { %3335 = sst [smem:[#allocation18_spill]] %s2920_s28  ;;  %p608_p13 = scmp.lt.s32.totalorder (!%p522_p10), %s2741_s21, 1 }
  0x23   : > { %s3336_s0 = sld [smem:[#allocation19_spill]] (!%p522_p10)  ;;  %s3337_s4 = sld [smem:[#allocation20_spill]] (!%p522_p10) }
  0x24   : > { %s3338_s5 = sld [smem:[#allocation21_spill]] (!%p522_p10)  ;;  %s602_s12 = scalar_lea.vmem (!%p522_p10), [#allocation4], %s2926_s23 }
  0x25   : > { %p2211_p0 = scmp.ne.s32.totalorder (!%p522_p10), %s2741_s21, 0 }
  0x26   : > { %s604_s16 = scalar_select %p603_p12, %s2745_s22, 1 }
  0x27   : > { %s609_s29 = scalar_select %p608_p13, %s2741_s21, 1 }
  0x28   : > { %s2284_s24 = sshll.u32 %s604_s16, 4  ;;  %646 = sbr.rel (%p2211_p0) target bundleno = 266 (0x10a), region = 84  ;;  %v2583_v0 = vld [vmem:[%s3287_s2] sm:$0xff] (!%p2211_p0)   ;;  %v2759_v1 = vmov (!%p2211_p0), 0.0   ;;  %v2584_v2 = vld [vmem:[%s3287_s2 + $0x8] sm:$0xff] (!%p2211_p0)   ;;  %vm2760_vm0 = vmmov (!%p2211_p0), 0  }
  0x29   : > { %s607_s28 = scalar_lea.vmem %s3336_s0, %s2284_s24  ;;  %s2198_s20 = sshll.u32 %s609_s29, 3  ;;  %2367 = vmatprep.subr.bf16.mxu0 (!%p2211_p0), %v2759_v1  ;;  %2371 = vmatprep.mubr.msk.bf16.mxu0 (!%p2211_p0), %vm2760_vm0, %v2759_v1  ;;  %vm673_vm1 = vcmask (!%p2211_p0), 261120   ;;  %vm718_vm2 = vcmask (!%p2211_p0), 523264   ;;  %v721_v6 = vld [vmem:[%s3286_s1] sm:$0xff] (!%p2211_p0) }
  0x2a   : > { %s2937_s15 = scalar_lea.vmem %s3337_s4, %s2198_s20  ;;  %s2285_s30 = sshll.u32 %s609_s29, 5  ;;  %2368 = vmatpush3.bf16.msra.mxu0 (!%p2211_p0), %v2583_v0  ;;  %v647_v3 = vld [vmem:[%s607_s28] sm:$0xff] (!%p2211_p0)  ;;  %v648_v4 = vld [vmem:[%s607_s28 + $0x8] sm:$0xff] (!%p2211_p0)  ;;  %722 = vst.msk [vmem:[#allocation3] sm:$0xff] (!%p2211_p0), %vm718_vm2, %v721_v6 }
  0x2b   : > { %s2942_s27 = scalar_lea.vmem %s3338_s5, %s2285_s30  ;;  %s2947_s16 = scalar_lea.vmem %s3291_s6, %s2285_s30  ;;  %2369 = vmatprep.subr.bf16.mxu0 (!%p2211_p0), %v2759_v1  ;;  %v649_v5 = vpack.c.bf16 (!%p2211_p0), %v648_v4, %v647_v3  ;;  %v2212_v7 = vld [vmem:[%s3288_s3] ss:$0 sm:$0xff] (!%p2211_p0) }
  0x2c   : > { %s2952_s24 = scalar_lea.vmem %s3292_s7, %s2285_s30  ;;  %s2957_s20 = scalar_lea.vmem %s3293_s8, %s2285_s30 }
  0x2d   : > { %s2289_s25 = sshll.u32 %s609_s29, 6  ;;  %s2290_s0 = sshll.u32 %s609_s29, 7 }
  0x2e   : > { %s2962_s4 = scalar_lea.vmem %s3294_s9, %s2289_s25  ;;  %s2967_s5 = scalar_lea.vmem %s3295_s10, %s2290_s0  ;;  %2370 = vmatpush3.bf16.msra.mxu0 (!%p2211_p0), %v2584_v2 }
  0x31   : > { %2372 = vmatmul.mubr.msk.bf16.vlgmr.msra.gmra.mrb[0].mxu0 %vm673_vm1, %v649_v5 }
 0x104   : > { %v711_v8 = vpop.f32.mrb[0].mxu0 }
 0x105   : > { %v712_v9 = vadd.f32 %v2212_v7, %v711_v8  ;;  %v2373_v10 = vpop.f32.mrb[1].mxu0 }
 0x106   : > { %v714_v11 = vpop.f32.mrb[2].mxu0 }
 0x107   : > { %719 = vst.msk [vmem:[#allocation2] sm:$0xff] %vm718_vm2, %v712_v9  ;;  %v715_v12 = vadd.f32 %v2212_v7, %v714_v11  ;;  %v2374_v13 = vpop.f32.mrb[3].mxu0 }
 0x109   : > { %720 = vst.msk [vmem:[#allocation2 + $0x8] sm:$0xff] %vm718_vm2, %v715_v12 }
 0x10a PF: > { %vm727_vm3 = vcmask 523264   ;;  %v2585_v35 = vld [vmem:[%s2942_s27] sm:$0xff]   ;;  %v2761_v36 = vmov 0.0   ;;  %v2586_v37 = vld [vmem:[%s2942_s27 + $0x8] sm:$0xff]   ;;  %v2588_v39 = vld [vmem:[%s2942_s27 + $0x10] sm:$0xff]   ;;  %vm2762_vm4 = vmmov 0   ;;  %v755_v47 = vlaneseq }
 0x10b   : > { %2375 = vmatprep.subr.bf16.mxu1 %v2761_v36  ;;  %v2587_v38 = vld [vmem:[%s2952_s24] sm:$0xff]   ;;  %v2589_v40 = vld [vmem:[%s2952_s24 + $0x8] sm:$0xff]   ;;  %v2590_v41 = vld [vmem:[%s2942_s27 + $0x18] sm:$0xff]   ;;  %2383 = vmatprep.mubr.msk.bf16.mxu1 %vm2762_vm4, %v2761_v36  ;;  %vm1102_vm5 = vcmask 1043456   ;;  %vm1036_vm6 = vcmask 130048   ;;  %vm1086_vm7 = vcmask 195584  }
 0x10c   : > { %v2983_v14 = vld [vmem:[#allocation3] sm:$0xff]  ;;  %2376 = vmatpush3.bf16.msra.mxu1 %v2585_v35  ;;  %2399 = vmatprep.subr.bf16.mxu0 %v2587_v38  ;;  %v2592_v43 = vld [vmem:[%s2947_s16] sm:$0xff]   ;;  %v2593_v44 = vld [vmem:[%s2952_s24 + $0x18] sm:$0xff]   ;;  %v3021_v53 = vshrl.u32 %v755_v47, 7  ;;  %s2764_s28 = smov 96   ;;  %s2765_s27 = smov 80  }
 0x10d   : > { %v767_v17 = vsel %vm727_vm3, %v2983_v14, 0.0  ;;  %2377 = vmatprep.subr.bf16.mxu1 %v2761_v36  ;;  %2400 = vmatpush3.bf16.msra.mxu0 %v2587_v38  ;;  %v2591_v42 = vld [vmem:[%s2952_s24 + $0x10] sm:$0xff]   ;;  %v3025_v57 = vld [vmem:[%s2937_s15] sm:$0xff]  ;;  %v2594_v10 = vld [vmem:[%s2947_s16 + $0x8] sm:$0xff]   ;;  %s2763_s15 = smov 112   ;;  %s2767_s24 = smov 32  }
 0x10e   : > { %v725_v16 = vld [vmem:[#allocation2] sm:$0xff]  ;;  %768 = vadd.xlane.f32.xlu0 %v767_v17  ;;  %2401 = vmatprep.subr.bf16.mxu0 %v2589_v40  ;;  %v782_v56 = vsub.s32 2, %v3021_v53  ;;  %v787_v58 = vsub.s32 3, %v3021_v53  ;;  %v757_v60 = vsub.s32 0, %v3021_v53  ;;  %v763_v0 = vsub.s32 1, %v3021_v53  ;;  %s2768_s19 = smov 48  }
 0x10f   : > { %v728_v19 = vsel %vm727_vm3, %v725_v16, 0.0  ;;  %vm1518_vm8 = vcmask 261120   ;;  %vm1520_vm9 = vcmask 392192   ;;  %p2271_p1 = scmp.ne.s32.totalorder %s2741_s21, 1 }
 0x110   : > { %v726_v15 = vld [vmem:[#allocation2 + $0x8] sm:$0xff]  ;;  %2378 = vmatpush3.bf16.msra.mxu1 %v2586_v37  ;;  %v783_v59 = vrot.slane %v3025_v57, %v782_v56  ;;  %v788_v63 = vrot.slane %v3025_v57, %v787_v58  ;;  %v758_v2 = vrot.slane %v3025_v57, %v757_v60  ;;  %v764_v7 = vrot.slane %v3025_v57, %v763_v0  ;;  %s3339_s0 = sld [smem:[#allocation22_spill]] (!%p2271_p1)  ;;  %s3340_s14 = sld [smem:[#allocation23_spill]] (!%p2271_p1) }
 0x111   : > { %v731_v18 = vsel %vm727_vm3, %v726_v15, 0.0  ;;  %2379 = vmatprep.subr.bf16.mxu1 %v2761_v36  ;;  %2402 = vmatpush3.bf16.msra.mxu0 %v2589_v40  ;;  %vm2771_vm10 = vmmov (!%p2271_p1), 0  }
 0x112   : > { %732 = vadd.xlane.f32.xlu1 %v731_v18  ;;  %729 = vadd.xlane.f32.xlu0 %v728_v19  ;;  %v2596_v18 = vld [vmem:[%s2947_s16 + $0x18] sm:$0xff]  }
 0x113   : > { %2403 = vmatprep.subr.bf16.mxu0 %v2591_v42 }
 0x114   : > { %2380 = vmatpush3.bf16.msra.mxu1 %v2588_v39 }
 0x115   : > { %2381 = vmatprep.subr.bf16.mxu1 %v2761_v36  ;;  %2404 = vmatpush3.bf16.msra.mxu0 %v2591_v42 }
 0x116   : > { %2405 = vmatprep.subr.bf16.mxu0 %v2593_v44 }
 0x118   : > { %2382 = vmatpush3.bf16.msra.mxu1 %v2590_v41 }
 0x119   : > { %2387 = vmatprep.subr.bf16.mxu1 %v2592_v43  ;;  %2406 = vmatpush3.bf16.msra.mxu0 %v2593_v44 }
 0x11a   : > { %2419 = vmatprep.subr.bf16.mxu0 %v2761_v36 }
 0x19b   : > { %v769_v20 = vpop.xlane.xlu0 %768 }
 0x19c   : > { %v770_v22 = vmul.f32 0.015625, %v769_v20 }
 0x19e   : > { %v2990_v24 = vsub.f32 %v2983_v14, %v770_v22 }
 0x19f   : > { %v733_v21 = vpop.xlane.xlu1 %732  ;;  %v730_v26 = vpop.xlane.xlu0 %729 }
 0x1a0   : > { %v736_v23 = vmul.f32 0.015625, %v733_v21  ;;  %v735_v27 = vmul.f32 0.015625, %v730_v26  ;;  %v772_v28 = vmul.f32 %v2990_v24, %v2990_v24 }
 0x1a2   : > { %v2992_v25 = vsub.f32 %v726_v15, %v736_v23  ;;  %v2998_v30 = vsub.f32 %v725_v16, %v735_v27  ;;  %v773_v31 = vsel %vm727_vm3, %v772_v28, 0.0  ;;  %v2595_v16 = vld [vmem:[%s2947_s16 + $0x10] sm:$0xff]   ;;  %s2766_s16 = smov 16  }
 0x1a3   : > { %774 = vadd.xlane.f32.xlu1 %v773_v31 }
 0x1a4   : > { %v740_v29 = vmul.f32 %v2992_v25, %v2992_v25  ;;  %v739_v33 = vmul.f32 %v2998_v30, %v2998_v30 }
 0x1a6   : > { %v744_v32 = vsel %vm727_vm3, %v740_v29, 0.0  ;;  %v741_v34 = vsel %vm727_vm3, %v739_v33, 0.0 }
 0x1a7   : > { %745 = vadd.xlane.f32.xlu1 %v744_v32  ;;  %742 = vadd.xlane.f32.xlu0 %v741_v34 }
 0x230   : > { %v775_v45 = vpop.xlane.xlu1 %774 }
 0x231   : > { %v776_v46 = vmul.f32 0.015625, %v775_v45 }
 0x233   : > { %v777_v48 = vadd.f32 1e-05, %v776_v46 }
 0x234   : > { %v746_v49 = vpop.xlane.xlu1 %745  ;;  %v743_v50 = vpop.xlane.xlu0 %742 }
 0x235   : > { %2629 = vrsqrt.f32 %v777_v48  ;;  %v748_v51 = vmul.f32 0.015625, %v746_v49  ;;  %v747_v52 = vmul.f32 0.015625, %v743_v50 }
 0x237   : > { %v750_v54 = vadd.f32 1e-05, %v748_v51  ;;  %v749_v55 = vadd.f32 1e-05, %v747_v52 }
 0x239   : > { %2631 = vrsqrt.f32 %v750_v54 }
 0x23a   : > { %2633 = vrsqrt.f32 %v749_v55 }
 0x23f   : > { %v2630_v61 = vpop.eup %2629 }
 0x240   : > { %v779_v62 = vmul.f32 %v2630_v61, %v2990_v24 }
 0x242   : > { %v784_v1 = vmul.f32 %v783_v59, %v779_v62 }
 0x243   : > { %v2632_v3 = vpop.eup %2631 }
 0x244   : > { %v2634_v4 = vpop.eup %2633  ;;  %v754_v5 = vmul.f32 %v2632_v3, %v2992_v25  ;;  %v789_v6 = vadd.f32 %v788_v63, %v784_v1 }
 0x245   : > { %v753_v8 = vmul.f32 %v2634_v4, %v2998_v30 }
 0x246   : > { %v790_v9 = vpack.c.bf16 %v789_v6, %v789_v6  ;;  %v760_v11 = vmul.f32 %v758_v2, %v754_v5 }
 0x247   : > { %v759_v12 = vmul.f32 %v758_v2, %v753_v8 }
 0x248   : > { %2384 = vmatmul.mubr.msk.bf16.vlgmr.msra.gmra.mrb[0].mxu1 %vm727_vm3, %v790_v9  ;;  %v766_v13 = vadd.f32 %v764_v7, %v760_v11 }
 0x249   : > { %2388 = vmatpush3.bf16.msra.mxu1 %v2592_v43  ;;  %v765_v15 = vadd.f32 %v764_v7, %v759_v12 }
 0x24a   : > { %2389 = vmatprep.subr.bf16.mxu1 %v2594_v10 }
 0x24b   : > { %v868_v17 = vpack.c.bf16 %v766_v13, %v765_v15 }
 0x24d   : > { %2390 = vmatpush3.bf16.msra.mxu1 %v2594_v10  ;;  %2395 = vmatprep.mubr.msk.bf16.mxu1 %vm727_vm3, %v868_v17 }
 0x24e   : > { %2407 = vmatprep.mubr.msk.bf16.mxu0 %vm727_vm3, %v868_v17  ;;  %2391 = vmatprep.subr.bf16.mxu1 %v2595_v16 }
 0x24f   : > { %2408 = vmatmul.mubr.msk.bf16.vlgmr.msra.gmra.mrb[0].mxu0 %vm727_vm3, %v790_v9 }
 0x250   : > { %2423 = vmatprep.mubr.msk.bf16.mxu0 %vm2762_vm4, %v2761_v36 }
 0x251   : > { %2392 = vmatpush3.bf16.msra.mxu1 %v2595_v16 }
 0x252   : > { %2393 = vmatprep.subr.bf16.mxu1 %v2596_v18 }
 0x255   : > { %2394 = vmatpush3.bf16.msra.mxu1 %v2596_v18 }
 0x256   : > { %2411 = vmatprep.subr.bf16.mxu1 %v2761_v36 }
 0x258   : > { %2396 = vmatmul.mubr.msk.bf16.vlgmr.msra.gmra.mrb[4].mxu1 %vm727_vm3, %v790_v9 }
 0x259   : > { %2415 = vmatprep.mubr.msk.bf16.mxu1 %vm2762_vm4, %v2761_v36 }
 0x31b   : > { %v860_v19 = vpop.f32.mrb[0].mxu1 }
 0x31c   : > { %v2385_v20 = vpop.f32.mrb[1].mxu1  ;;  %v866_v31 = vmul.f32 0.25, %v860_v19 }
 0x31d   : > { %v863_v21 = vpop.f32.mrb[2].mxu1 }
 0x31e   : > { %v2386_v22 = vpop.f32.mrb[3].mxu1  ;;  %v3065_v38 = vpack.c.bf16 %v866_v31, %v866_v31 }
 0x322   : > { %v2409_v23 = vpop.f32.mrb[0].mxu0 }
 0x323   : > { %v1020_v24 = vpop.f32.mrb[1].mxu0  ;;  %v3052_v28 = vpack.c.bf16 %v2409_v23, %v2409_v23 }
 0x324   : > { %v2410_v25 = vpop.f32.mrb[2].mxu0 }
 0x325   : > { %v1023_v26 = vpop.f32.mrb[3].mxu0  ;;  %v1104_v30 = vsel %vm1102_vm5, %v3052_v28, 0 }
 0x326   : > { %v3050_v27 = vpack.c.bf16 %v1023_v26, %v1020_v24 }
 0x328   : > { %2420 = vmatpush3.bf16.msra.mxu0 %v3050_v27 }
 0x329   : > { %2421 = vmatprep.subr.bf16.mxu0 %v2761_v36 }
 0x32b   : > { %v2397_v29 = vpop.f32.mrb[4].mxu1 }
 0x32c   : > { %v3058_v32 = vpack.c.bf16 %v2397_v29, %v2397_v29  ;;  %2422 = vmatpush3.bf16.msra.mxu0 %v1104_v30  ;;  %v938_v33 = vpop.f32.mrb[5].mxu1 }
 0x32d   : > { %v2398_v34 = vpop.f32.mrb[6].mxu1  ;;  %2435 = vmatprep.subr.bf16.mxu0 %v2761_v36 }
 0x32e   : > { %1153 = vrot.lane.b32.xlu1 %v3058_v32, %s2763_s15  ;;  %v941_v35 = vpop.f32.mrb[7].mxu1  ;;  %v1044_v40 = vsel %vm1036_vm6, %v3058_v32, 0 }
 0x32f   : > { %v3063_v37 = vpack.c.bf16 %v941_v35, %v938_v33 }
 0x331   : > { %1151 = vrot.lane.b32.xlu0 %v3063_v37, %s2763_s15  ;;  %v1041_v39 = vsel %vm1036_vm6, %v3063_v37, 0 }
 0x332   : > { %1147 = vrot.lane.b32.xlu1 %v3065_v38, %s2763_s15  ;;  %2412 = vmatpush3.bf16.xpose.msra.mxu1 %v1041_v39 }
 0x333   : > { %2413 = vmatprep.subr.bf16.mxu1 %v2761_v36 }
 0x33a   : > { %2414 = vmatpush3.bf16.xpose.msra.mxu1 %v1044_v40 }
 0x33b   : > { %2427 = vmatprep.subr.bf16.mxu1 %v2761_v36 }
 0x341   : > { %2416 = vmatmul.mubr.msk.bf16.vlgmr.msra.gmra.mrb[8].mxu1 %vm1036_vm6, %v3065_v38 }
 0x342   : > { %2431 = vmatprep.mubr.msk.bf16.mxu1 %vm2762_vm4, %v2761_v36 }
 0x3a0   : > { %v1154_v43 = vpop.permute.xlu1 %1153 }
 0x3a1   : > { %v1162_v44 = vsel %vm1036_vm6, %v1154_v43, 0 }
 0x3a3   : > { %v1152_v41 = vpop.permute.xlu0 %1151 }
 0x3a4   : > { %v1159_v42 = vsel %vm1036_vm6, %v1152_v41, 0  ;;  %v1148_v45 = vpop.permute.xlu1 %1147 }
 0x3a5   : > { %2428 = vmatpush3.bf16.xpose.msra.mxu1 %v1159_v42 }
 0x3a6   : > { %2429 = vmatprep.subr.bf16.mxu1 %v2761_v36 }
 0x3ad   : > { %2430 = vmatpush3.bf16.xpose.msra.mxu1 %v1162_v44 }
 0x3ae   : > { %2451 = vmatprep.subr.bf16.mxu1 %v2761_v36 }
 0x3b4   : > { %2432 = vmatmul.mubr.msk.bf16.vlgmr.msra.gmra.mrb[12].mxu1 %vm1036_vm6, %v1148_v45 }
 0x3b5   : > { %2455 = vmatprep.mubr.msk.bf16.mxu1 %vm2762_vm4, %v2761_v36 }
 0x414   : > { %v1080_v46 = vpop.f32.mrb[8].mxu1 }
 0x415   : > { %v2417_v47 = vpop.f32.mrb[9].mxu1  ;;  %v1087_v48 = vsel %vm1086_vm7, %v1080_v46, -inf }
 0x416   : > { %1088 = vmax.xlane.f32.xlu1 %v1087_v48  ;;  %v1083_v49 = vpop.f32.mrb[10].mxu1 }
 0x417   : > { %v2418_v50 = vpop.f32.mrb[11].mxu1 }
 0x427   : > { %1218 = vrot.lane.b32.xlu1 %v3050_v27, %s2763_s15 }
 0x42b   : > { %1271 = vrot.lane.b32.xlu1 %v3063_v37, %s2764_s28 }
 0x42f   : > { %1273 = vrot.lane.b32.xlu1 %v3058_v32, %s2764_s28 }
 0x433   : > { %1269 = vrot.lane.b32.xlu1 %v3065_v38, %s2764_s28 }
 0x437   : > { %1338 = vrot.lane.b32.xlu1 %v3052_v28, %s2764_s28 }
 0x487   : > { %v1198_v51 = vpop.f32.mrb[12].mxu1 }
 0x488   : > { %v2433_v52 = vpop.f32.mrb[13].mxu1  ;;  %v1204_v54 = vsel %vm1086_vm7, %v1198_v51, -inf }
 0x489   : > { %1205 = vmax.xlane.f32.xlu0 %v1204_v54  ;;  %v1201_v55 = vpop.f32.mrb[14].mxu1 }
 0x48a   : > { %v2434_v56 = vpop.f32.mrb[15].mxu1 }
 0x4a3   : > { %v1089_v58 = vpop.xlane.xlu1 %1088 }
 0x4a4   : > { %v1090_v59 = vsub.f32 %v1080_v46, %v1089_v58 }
 0x4a6   : > { %v1091_v60 = vmul.f32 1.442695, %v1090_v59 }
 0x4a7   : > { %v1219_v8 = vpop.permute.xlu1 %1218 }
 0x4a8   : > { %2635 = vpow2.f32 %v1091_v60 }
 0x4ab   : > { %v1272_v15 = vpop.permute.xlu1 %1271 }
 0x4ac   : > { %v1279_v17 = vsel %vm1036_vm6, %v1272_v15, 0  ;;  %v2600_v15 = vld [vmem:[%s2957_s20 + $0x18] sm:$0xff]  }
 0x4af   : > { %v1274_v18 = vpop.permute.xlu1 %1273 }
 0x4b0   : > { %v1282_v19 = vsel %vm1036_vm6, %v1274_v18, 0 }
 0x4b2   : > { %v2636_v61 = vpop.eup %2635 }
 0x4b3   : > { %v1093_v62 = vsel %vm1086_vm7, %v2636_v61, 0.0  ;;  %v1270_v20 = vpop.permute.xlu1 %1269 }
 0x4b4   : > { %1094 = vadd.xlane.f32.xlu0 %v1093_v62 }
 0x4b7   : > { %v1339_v44 = vpop.permute.xlu1 %1338 }
 0x4b8   : > { %v1345_v45 = vsel %vm1102_vm5, %v1339_v44, 0  ;;  %v2606_v44 = vld [vmem:[%s2962_s4 + $0x14] ss:$8 sps:$4 sm:$0xff]  }
 0x516   : > { %v1206_v63 = vpop.xlane.xlu0 %1205 }
 0x517   : > { %v1207_v0 = vsub.f32 %v1198_v51, %v1206_v63 }
 0x519   : > { %v1208_v1 = vmul.f32 1.442695, %v1207_v0 }
 0x51b   : > { %2637 = vpow2.f32 %v1208_v1 }
 0x525   : > { %v2638_v2 = vpop.eup %2637 }
 0x526   : > { %v1210_v3 = vsel %vm1086_vm7, %v2638_v2, 0.0 }
 0x527   : > { %1211 = vadd.xlane.f32.xlu0 %v1210_v3 }
 0x53d   : > { %1220 = vrot.lane.b32.xlu0 %v3052_v28, %s2763_s15 }
 0x541   : > { %v1095_v4 = vpop.xlane.xlu0 %1094 }
 0x542   : > { %2639 = vrcp.f32 %v1095_v4 }
 0x54c   : > { %v2640_v5 = vpop.eup %2639 }
 0x54d   : > { %v1097_v6 = vmul.f32 %v2640_v5, %v2636_v61 }
 0x54f   : > { %v1098_v7 = vpack.c.bf16 %v1097_v6, %v1097_v6 }
 0x551   : > { %2424 = vmatmul.mubr.msk.bf16.vlgmr.msra.gmra.mrb[4].mxu0 %vm1086_vm7, %v1098_v7 }
 0x552   : > { %2436 = vmatpush3.bf16.msra.mxu0 %v1219_v8  ;;  %2439 = vmatprep.mubr.msk.bf16.mxu0 %vm2762_vm4, %v2761_v36 }
 0x553   : > { %2437 = vmatprep.subr.bf16.mxu0 %v2761_v36 }
 0x5b4   : > { %v1212_v9 = vpop.xlane.xlu0 %1211 }
 0x5b5   : > { %2641 = vrcp.f32 %v1212_v9 }
 0x5b8   : > { %v1221_v10 = vpop.permute.xlu0 %1220 }
 0x5b9   : > { %v1227_v11 = vsel %vm1102_vm5, %v1221_v10, 0 }
 0x5ba   : > { %2438 = vmatpush3.bf16.msra.mxu0 %v1227_v11  ;;  %v2597_v11 = vld [vmem:[%s2957_s20] sm:$0xff]  }
 0x5bb   : > { %2443 = vmatprep.subr.bf16.mxu0 %v2761_v36 }
 0x5bf   : > { %v2642_v12 = vpop.eup %2641 }
 0x5c0   : > { %v1214_v13 = vmul.f32 %v2642_v12, %v2638_v2  ;;  %v2598_v12 = vld [vmem:[%s2957_s20 + $0x8] sm:$0xff]  }
 0x5c2   : > { %v1215_v16 = vpack.c.bf16 %v1214_v13, %v1214_v13  ;;  %v2599_v13 = vld [vmem:[%s2957_s20 + $0x10] sm:$0xff]  }
 0x5c4   : > { %2440 = vmatmul.mubr.msk.bf16.vlgmr.msra.gmra.mrb[8].mxu0 %vm1086_vm7, %v1215_v16 }
 0x5c5   : > { %2444 = vmatpush3.bf16.xpose.msra.mxu0 %v1279_v17  ;;  %2447 = vmatprep.mubr.msk.bf16.mxu0 %vm2762_vm4, %v2761_v36 }
 0x5c6   : > { %2445 = vmatprep.subr.bf16.mxu0 %v2761_v36 }
 0x5cd   : > { %2446 = vmatpush3.bf16.xpose.msra.mxu0 %v1282_v19 }
 0x5ce   : > { %2467 = vmatprep.subr.bf16.mxu0 %v2761_v36 }
 0x5d4   : > { %2448 = vmatmul.mubr.msk.bf16.vlgmr.msra.gmra.mrb[12].mxu0 %vm1036_vm6, %v1270_v20 }
 0x5d5   : > { %2471 = vmatprep.mubr.msk.bf16.mxu0 %vm2762_vm4, %v2761_v36 }
 0x624   : > { %v3120_v21 = vpop.f32.mrb[4].mxu0 }
 0x625   : > { %v2425_v22 = vpop.f32.mrb[5].mxu0 }
 0x626   : > { %v1143_v23 = vpop.f32.mrb[6].mxu0 }
 0x627   : > { %v2426_v24 = vpop.f32.mrb[7].mxu0 }
 0x697   : > { %v1263_v25 = vpop.f32.mrb[8].mxu0 }
 0x698   : > { %v2441_v26 = vpop.f32.mrb[9].mxu0 }
 0x699   : > { %v1266_v29 = vpop.f32.mrb[10].mxu0 }
 0x69a   : > { %v2442_v30 = vpop.f32.mrb[11].mxu0 }
 0x6a7   : > { %v1318_v31 = vpop.f32.mrb[12].mxu0 }
 0x6a8   : > { %v2449_v33 = vpop.f32.mrb[13].mxu0  ;;  %v1324_v34 = vsel %vm1086_vm7, %v1318_v31, -inf }
 0x6a9   : > { %1325 = vmax.xlane.f32.xlu0 %v1324_v34  ;;  %v1321_v35 = vpop.f32.mrb[14].mxu0 }
 0x6aa   : > { %v2450_v39 = vpop.f32.mrb[15].mxu0 }
 0x6bf   : > { %1336 = vrot.lane.b32.xlu0 %v3050_v27, %s2764_s28 }
 0x6c3   : > { %1389 = vrot.lane.b32.xlu0 %v3063_v37, %s2765_s27 }
 0x6c7   : > { %1387 = vrot.lane.b32.xlu0 %v3065_v38, %s2765_s27 }
 0x736   : > { %v1326_v40 = vpop.xlane.xlu0 %1325 }
 0x737   : > { %v1327_v41 = vsub.f32 %v1318_v31, %v1326_v40 }
 0x739   : > { %v1328_v42 = vmul.f32 1.442695, %v1327_v41 }
 0x73a   : > { %v1337_v43 = vpop.permute.xlu0 %1336 }
 0x73b   : > { %2643 = vpow2.f32 %v1328_v42  ;;  %2452 = vmatpush3.bf16.msra.mxu1 %v1337_v43  ;;  %v2603_v42 = vld [vmem:[%s2962_s4 + $0x4] ss:$8 sps:$4 sm:$0xff]   ;;  %v2601_v43 = vld [vmem:[%s2962_s4] ss:$8 sps:$4 sm:$0xff]  }
 0x73c   : > { %2453 = vmatprep.subr.bf16.mxu1 %v2761_v36 }
 0x73e   : > { %v1390_v49 = vpop.permute.xlu0 %1389 }
 0x73f   : > { %2454 = vmatpush3.bf16.msra.mxu1 %v1345_v45  ;;  %v1397_v51 = vsel %vm1036_vm6, %v1390_v49, 0  ;;  %v2604_v45 = vld [vmem:[%s2962_s4 + $0x10] ss:$8 sps:$4 sm:$0xff]   ;;  %v2613_v49 = vld [vmem:[%s2967_s5 + $0x40] sm:$0xff]  }
 0x740   : > { %2459 = vmatprep.subr.bf16.mxu1 %v2761_v36 }
 0x745   : > { %v2644_v46 = vpop.eup %2643 }
 0x746   : > { %v1330_v37 = vsel %vm1086_vm7, %v2644_v46, 0.0 }
 0x747   : > { %1331 = vadd.xlane.f32.xlu1 %v1330_v37  ;;  %v2607_v37 = vld [vmem:[%s2962_s4 + $0x20] ss:$8 sps:$4 sm:$0xff]  }
 0x758   : > { %1391 = vrot.lane.b32.xlu1 %v3058_v32, %s2765_s27  ;;  %v1388_v32 = vpop.permute.xlu0 %1387 }
 0x7d4   : > { %v1332_v38 = vpop.xlane.xlu1 %1331 }
 0x7d5   : > { %2645 = vrcp.f32 %v1332_v38  ;;  %v2610_v38 = vld [vmem:[%s2962_s4 + $0x30] ss:$8 sps:$4 sm:$0xff]  }
 0x7d8   : > { %v1392_v52 = vpop.permute.xlu1 %1391 }
 0x7d9   : > { %v1400_v54 = vsel %vm1036_vm6, %v1392_v52, 0 }
 0x7df   : > { %v2646_v47 = vpop.eup %2645 }
 0x7e0   : > { %v1334_v48 = vmul.f32 %v2646_v47, %v2644_v46  ;;  %v2609_v46 = vld [vmem:[%s2962_s4 + $0x24] ss:$8 sps:$4 sm:$0xff]   ;;  %v2612_v47 = vld [vmem:[%s2962_s4 + $0x34] ss:$8 sps:$4 sm:$0xff]  }
 0x7e2   : > { %v1335_v50 = vpack.c.bf16 %v1334_v48, %v1334_v48  ;;  %v2769_v48 = vmov 0  }
 0x7e4   : > { %2456 = vmatmul.mubr.msk.bf16.vlgmr.msra.gmra.mrb[16].mxu1 %vm1086_vm7, %v1335_v50  ;;  %v2614_v50 = vld [vmem:[%s2967_s5] sm:$0xff]  }
 0x7e5   : > { %2460 = vmatpush3.bf16.xpose.msra.mxu1 %v1397_v51  ;;  %2463 = vmatprep.mubr.msk.bf16.mxu1 %vm2762_vm4, %v2761_v36 }
 0x7e6   : > { %2461 = vmatprep.subr.bf16.mxu1 %v2761_v36 }
 0x7ed   : > { %2462 = vmatpush3.bf16.xpose.msra.mxu1 %v1400_v54 }
 0x7ee   : > { %1674 = vmatprep.subr.bf16.mxu1 %v2603_v42 }
 0x7f4   : > { %2464 = vmatmul.mubr.msk.bf16.vlgmr.msra.gmra.mrb[20].mxu1 %vm1036_vm6, %v1388_v32  ;;  %v1614_v32 = vsub.s32 4, %v3021_v53 }
 0x7f5   : > { %1675 = vmatpush1.bf16.msra.mxu1 %v2601_v43  ;;  %1706 = vmatprep.mubr.bf16.mxu1 %v2769_v48 }
 0x7f6   : > { %1676 = vmatprep.subr.bf16.mxu1 %v2606_v44 }
 0x7f9   : > { %1677 = vmatpush1.bf16.msra.mxu1 %v2604_v45 }
 0x7fa   : > { %1678 = vmatprep.subr.bf16.mxu1 %v2609_v46  ;;  %v2657_v46 = vld [vmem:[%s3296_s11] sm:$0xff] (!%p2271_p1)  }
 0x7fd   : > { %1679 = vmatpush1.bf16.msra.mxu1 %v2607_v37  ;;  %v2770_v37 = vmov (!%p2271_p1), 0.0  }
 0x7fe   : > { %1680 = vmatprep.subr.bf16.mxu1 %v2612_v47  ;;  %v2660_v47 = vld [vmem:[%s3296_s11 + $0x18] sm:$0xff] (!%p2271_p1)  }
 0x801   : > { %1681 = vmatpush1.bf16.msra.mxu1 %v2610_v38  ;;  %v2658_v38 = vld [vmem:[%s3296_s11 + $0x8] sm:$0xff] (!%p2271_p1)  }
 0x8b7   : > { %v1381_v55 = vpop.f32.mrb[16].mxu1 }
 0x8b8   : > { %v2457_v56 = vpop.f32.mrb[17].mxu1 }
 0x8b9   : > { %v1384_v58 = vpop.f32.mrb[18].mxu1  ;;  %v1615_v56 = vrot.slane %v3025_v57, %v1614_v32 }
 0x8ba   : > { %v2458_v59 = vpop.f32.mrb[19].mxu1 }
 0x8c7   : > { %v1436_v60 = vpop.f32.mrb[20].mxu1 }
 0x8c8   : > { %v2465_v61 = vpop.f32.mrb[21].mxu1  ;;  %v1442_v62 = vsel %vm1086_vm7, %v1436_v60, -inf }
 0x8c9   : > { %1443 = vmax.xlane.f32.xlu1 %v1442_v62  ;;  %v1439_v63 = vpop.f32.mrb[22].mxu1 }
 0x8ca   : > { %v2466_v0 = vpop.f32.mrb[23].mxu1 }
 0x8cb   : > { %v2615_v0 = vld [vmem:[%s2967_s5 + $0x48] sm:$0xff]  }
 0x8da   : > { %1456 = vrot.lane.b32.xlu1 %v3052_v28, %s2765_s27 }
 0x8de   : > { %1506 = vrot.lane.b32.xlu1 %v1263_v25, %s2766_s16 }
 0x956   : > { %v1444_v1 = vpop.xlane.xlu1 %1443 }
 0x957   : > { %v1445_v2 = vsub.f32 %v1436_v60, %v1444_v1  ;;  %v2616_v1 = vld [vmem:[%s2967_s5 + $0x8] sm:$0xff]  }
 0x959   : > { %v1446_v3 = vmul.f32 1.442695, %v1445_v2  ;;  %v2618_v2 = vld [vmem:[%s2967_s5 + $0x10] sm:$0xff]  }
 0x95a   : > { %v1457_v7 = vpop.permute.xlu1 %1456 }
 0x95b   : > { %2647 = vpow2.f32 %v1446_v3  ;;  %v1463_v8 = vsel %vm1102_vm5, %v1457_v7, 0  ;;  %v2620_v3 = vld [vmem:[%s2967_s5 + $0x18] sm:$0xff]   ;;  %v2625_v7 = vld [vmem:[%s2967_s5 + $0x70] sm:$0xff]  }
 0x95e   : > { %v1507_v20 = vpop.permute.xlu1 %1506 }
 0x95f   : > { %v1517_v23 = vsel %vm1036_vm6, %v3120_v21, %v1507_v20 }
 0x965   : > { %v2648_v4 = vpop.eup %2647 }
 0x966   : > { %v1448_v5 = vsel %vm1086_vm7, %v2648_v4, 0.0 }
 0x967   : > { %1449 = vadd.xlane.f32.xlu0 %v1448_v5  ;;  %v2622_v5 = vld [vmem:[%s2967_s5 + $0x20] sm:$0xff]  }
 0x97d   : > { %1454 = vrot.lane.b32.xlu0 %v3050_v27, %s2765_s27  ;;  %s3341_s27 = sld [smem:[#allocation24_spill]] (!%p2271_p1) }
 0x981   : > { %1510 = vrot.lane.b32.xlu0 %v1381_v55, %s2767_s24  ;;  %v1619_v55 = vsub.s32 5, %v3021_v53  ;;  %v2617_v53 = vld [vmem:[%s2967_s5 + $0x50] sm:$0xff]  }
 0x983   : > { %v1620_v60 = vrot.slane %v3025_v57, %v1619_v55  ;;  %v2619_v57 = vld [vmem:[%s2967_s5 + $0x58] sm:$0xff]  }
 0x9f4   : > { %v1450_v6 = vpop.xlane.xlu0 %1449 }
 0x9f5   : > { %2649 = vrcp.f32 %v1450_v6  ;;  %v2623_v6 = vld [vmem:[%s2967_s5 + $0x68] sm:$0xff]  }
 0x9f8   : > { %v1455_v28 = vpop.permute.xlu0 %1454 }
 0x9f9   : > { %2468 = vmatpush3.bf16.msra.mxu0 %v1455_v28  ;;  %v2624_v28 = vld [vmem:[%s2967_s5 + $0x28] sm:$0xff]  }
 0x9fa   : > { %2469 = vmatprep.subr.bf16.mxu0 %v2761_v36 }
 0x9fc   : > { %v1511_v22 = vpop.permute.xlu0 %1510 }
 0x9fd   : > { %2470 = vmatpush3.bf16.msra.mxu0 %v1463_v8  ;;  %v1519_v24 = vsel %vm1518_vm8, %v1517_v23, %v1511_v22  ;;  %v2626_v8 = vld [vmem:[%s2967_s5 + $0x30] sm:$0xff]  }
 0x9fe   : > { %2475 = vmatprep.subr.bf16.mxu0 %v2761_v36 }
 0x9ff   : > { %v2650_v9 = vpop.eup %2649 }
 0xa00   : > { %v1452_v27 = vmul.f32 %v2650_v9, %v2648_v4  ;;  %v2621_v4 = vld [vmem:[%s2967_s5 + $0x60] sm:$0xff]   ;;  %v2627_v9 = vld [vmem:[%s2967_s5 + $0x78] sm:$0xff]  }
 0xa02   : > { %v1453_v10 = vpack.c.bf16 %v1452_v27, %v1452_v27  ;;  %v2628_v27 = vld [vmem:[%s2967_s5 + $0x38] sm:$0xff]  }
 0xa04   : > { %2472 = vmatmul.mubr.msk.bf16.vlgmr.msra.gmra.mrb[16].mxu0 %vm1086_vm7, %v1453_v10 }
 0xa05   : > { %2483 = vmatprep.mubr.msk.bf16.mxu0 %vm2762_vm4, %v2761_v36  ;;  %2476 = vmatpush3.bf16.msra.mxu0 %v2597_v11 }
 0xa06   : > { %2477 = vmatprep.subr.bf16.mxu0 %v2761_v36 }
 0xa09   : > { %2478 = vmatpush3.bf16.msra.mxu0 %v2598_v12 }
 0xa0a   : > { %2479 = vmatprep.subr.bf16.mxu0 %v2761_v36 }
 0xa0d   : > { %2480 = vmatpush3.bf16.msra.mxu0 %v2599_v13 }
 0xa0e   : > { %2481 = vmatprep.subr.bf16.mxu0 %v2761_v36 }
 0xa11   : > { %2482 = vmatpush3.bf16.msra.mxu0 %v2600_v15 }
 0xa12   : > { %2340 = vmatprep.subr.bf16.mxu0 %v2613_v49  ;;  %v2272_v49 = vld [vmem:[%s3339_s0] ss:$0 sm:$0xff] (!%p2271_p1) }
 0xad7   : > { %v1499_v16 = vpop.f32.mrb[16].mxu0 }
 0xad8   : > { %1514 = vrot.lane.b32.xlu1 %v1499_v16, %s2768_s19  ;;  %v2473_v17 = vpop.f32.mrb[17].mxu0 }
 0xad9   : > { %v1502_v18 = vpop.f32.mrb[18].mxu0 }
 0xada   : > { %v2474_v19 = vpop.f32.mrb[19].mxu0 }
 0xb4a   : > { %v1515_v25 = vpop.permute.xlu1 %1514 }
 0xb4b   : > { %v1521_v26 = vsel %vm1520_vm9, %v1519_v24, %v1515_v25 }
 0xb4c   : > { %v1522_v36 = vpack.c.bf16 %v1521_v26, %v1521_v26 }
 0xb4e   : > { %2484 = vmatmul.mubr.msk.bf16.vlgmr.msra.gmra.mrb[20].mxu0 %vm727_vm3, %v1522_v36 }
 0xb4f   : > { %2341 = vmatpush3.bf16.msra.mxu0 %v2614_v50 }
 0xb50   : > { %2342 = vmatprep.subr.bf16.mxu0 %v2615_v0 }
 0xb53   : > { %2343 = vmatpush3.bf16.msra.mxu0 %v2616_v1 }
 0xb54   : > { %2344 = vmatprep.subr.bf16.mxu0 %v2617_v53  ;;  %v2278_v53 = vld [vmem:[%s3340_s14] ss:$0 sm:$0xff] (!%p2271_p1) }
 0xb57   : > { %2345 = vmatpush3.bf16.msra.mxu0 %v2618_v2 }
 0xb58   : > { %2346 = vmatprep.subr.bf16.mxu0 %v2619_v57  ;;  %v2279_v57 = vld [vmem:[%s3341_s27] ss:$0 sm:$0xff] (!%p2271_p1) }
 0xb5b   : > { %2347 = vmatpush3.bf16.msra.mxu0 %v2620_v3 }
 0xb5c   : > { %2348 = vmatprep.subr.bf16.mxu0 %v2621_v4 }
 0xb5f   : > { %2349 = vmatpush3.bf16.msra.mxu0 %v2622_v5 }
 0xb60   : > { %2350 = vmatprep.subr.bf16.mxu0 %v2623_v6 }
 0xb63   : > { %2351 = vmatpush3.bf16.msra.mxu0 %v2624_v28 }
 0xb64   : > { %2352 = vmatprep.subr.bf16.mxu0 %v2625_v7 }
 0xb67   : > { %2353 = vmatpush3.bf16.msra.mxu0 %v2626_v8 }
 0xb68   : > { %2354 = vmatprep.subr.bf16.mxu0 %v2627_v9 }
 0xb6b   : > { %2355 = vmatpush3.bf16.msra.mxu0 %v2628_v27 }
 0xb6c   : > { %2487 = vmatprep.subr.bf16.mxu0 (!%p2271_p1), %v2770_v37 }
 0xc21   : > { %v1592_v29 = vpop.f32.mrb[20].mxu0 }
 0xc22   : > { %v3165_v30 = vadd.f32 %v1592_v29, %v2983_v14  ;;  %v2485_v31 = vpop.f32.mrb[21].mxu0 }
 0xc23   : > { %v1595_v33 = vpop.f32.mrb[22].mxu0 }
 0xc24   : > { %v2486_v34 = vpop.f32.mrb[23].mxu0  ;;  %v1599_v21 = vsel %vm727_vm3, %v3165_v30, 0.0 }
 0xc25   : > { %1600 = vadd.xlane.f32.xlu0 %v1599_v21 }
 0xcb2   : > { %v1601_v35 = vpop.xlane.xlu0 %1600 }
 0xcb3   : > { %v1602_v39 = vmul.f32 0.015625, %v1601_v35 }
 0xcb5   : > { %v1603_v40 = vsub.f32 %v3165_v30, %v1602_v39 }
 0xcb7   : > { %v1604_v41 = vmul.f32 %v1603_v40, %v1603_v40 }
 0xcb9   : > { %v1605_v14 = vsel %vm727_vm3, %v1604_v41, 0.0 }
 0xcba   : > { %1606 = vadd.xlane.f32.xlu1 %v1605_v14 }
 0xd47   : > { %v1607_v51 = vpop.xlane.xlu1 %1606 }
 0xd48   : > { %v1608_v52 = vmul.f32 0.015625, %v1607_v51 }
 0xd4a   : > { %v1609_v54 = vadd.f32 1e-05, %v1608_v52 }
 0xd4c   : > { %2651 = vrsqrt.f32 %v1609_v54 }
 0xd56   : > { %v2652_v58 = vpop.eup %2651 }
 0xd57   : > { %v1611_v59 = vmul.f32 %v2652_v58, %v1603_v40 }
 0xd59   : > { %v1616_v61 = vmul.f32 %v1615_v56, %v1611_v59 }
 0xd5b   : > { %v1621_v62 = vadd.f32 %v1620_v60, %v1616_v61 }
 0xd5d   : > { %v1622_v63 = vpack.c.bf16 %v1621_v62, %v1621_v62 }
 0xd5f   : > { %2254 = vmatmul.mubr.msk.bf16.vlgmr.msra.gmra.mrb[24].mxu1 %vm727_vm3, %v1622_v63 }
 0xe32   : > { %v1708_v10 = vpop.f32.mrb[24].mxu1 }
 0xe33   : > { %v1717_v11 = vmul.f32 0.044715, %v1708_v10  ;;  %v1710_v12 = vpop.f32.mrb[25].mxu1  ;;  %v1715_v29 = vmul.f32 0.5, %v1708_v10 }
 0xe34   : > { %v1718_v13 = vmul.f32 0.044715, %v1710_v12  ;;  %v1712_v15 = vpop.f32.mrb[26].mxu1  ;;  %v1716_v33 = vmul.f32 0.5, %v1710_v12 }
 0xe35   : > { %v1719_v16 = vmul.f32 %v1717_v11, %v1708_v10  ;;  %v1713_v17 = vpop.f32.mrb[27].mxu1 }
 0xe36   : > { %v1720_v18 = vmul.f32 %v1718_v13, %v1710_v12 }
 0xe37   : > { %v1721_v19 = vmul.f32 %v1719_v16, %v1708_v10 }
 0xe38   : > { %v1722_v20 = vmul.f32 %v1720_v18, %v1710_v12 }
 0xe39   : > { %v1723_v22 = vadd.f32 %v1721_v19, %v1708_v10 }
 0xe3a   : > { %v1724_v23 = vadd.f32 %v1722_v20, %v1710_v12 }
 0xe3b   : > { %v1725_v24 = vmul.f32 0.7978846, %v1723_v22 }
 0xe3c   : > { %v1726_v25 = vmul.f32 0.7978846, %v1724_v23 }
 0xe3d   : > { %2653 = vtanh.f32 %v1725_v24 }
 0xe3e   : > { %2655 = vtanh.f32 %v1726_v25 }
 0xe47   : > { %v2654_v26 = vpop.eup %2653 }
 0xe48   : > { %v2656_v36 = vpop.eup %2655  ;;  %v1729_v31 = vadd.f32 1.0, %v2654_v26 }
 0xe49   : > { %v1730_v34 = vadd.f32 1.0, %v2656_v36 }
 0xe4a   : > { %v1731_v21 = vmul.f32 %v1729_v31, %v1715_v29 }
 0xe4b   : > { %v1732_v35 = vmul.f32 %v1730_v34, %v1716_v33 }
 0xe4c   : > { %v1733_v40 = vpack.c.bf16 %v1731_v21, %v1731_v21 }
 0xe4d   : > { %v1734_v39 = vpack.c.bf16 %v1732_v35, %v1732_v35 }
 0xe4f   : > { %1895 = vmatprep.mubr.bf16.mxu0 %v1734_v39 }
 0xe50   : > { %1896 = vmatmul.mubr.bf16.vlgmr.msra.gmra.mrb[24].mxu0 %v1733_v40 }
 0xe51   : > { %2488 = vmatpush3.bf16.msra.mxu0 (!%p2271_p1), %v2657_v46  ;;  %2495 = vmatprep.mubr.msk.bf16.mxu0 (!%p2271_p1), %vm2771_vm10, %v2770_v37 }
 0xe52   : > { %2489 = vmatprep.subr.bf16.mxu0 (!%p2271_p1), %v2770_v37 }
 0xe55   : > { %2490 = vmatpush3.bf16.msra.mxu0 (!%p2271_p1), %v2658_v38 }
 0xe56   : > { %2491 = vmatprep.subr.bf16.mxu0 (!%p2271_p1), %v2770_v37 }
 0xf23   : > { %v2356_v41 = vpop.f32.mrb[24].mxu0  ;;  %1908 = sbr.rel (%p2271_p1) target bundleno = 4415 (0x113f), region = 88 }
 0xf24   : > { %v2357_v14 = vpop.f32.mrb[25].mxu0 }
 0xf25   : > { %v2358_v42 = vadd.f32 %v2357_v14, %v2356_v41  ;;  %v2359_v43 = vpop.f32.mrb[26].mxu0 }
 0xf26   : > { %v2360_v44 = vpop.f32.mrb[27].mxu0 }
 0xf27   : > { %v1903_v45 = vadd.f32 %v2358_v42, %v3165_v30  ;;  %v2659_v30 = vld [vmem:[%s3296_s11 + $0x10] sm:$0xff] (!%p2271_p1)  }
 0xf28   : > { %2492 = vmatpush3.bf16.msra.mxu0 (!%p2271_p1), %v2659_v30 }
 0xf29   : > { %1904 = vst.msk [vmem:[#allocation3] sm:$0xff] %vm727_vm3, %v1903_v45  ;;  %2493 = vmatprep.subr.bf16.mxu0 (!%p2271_p1), %v2770_v37  ;;  %v1909_v48 = vpack.c.bf16 (!%p2271_p1), %v1903_v45, %v1903_v45 }
 0xf2c   : > { %2494 = vmatpush3.bf16.msra.mxu0 %v2660_v47 }
 0xf2f   : > { %2496 = vmatmul.mubr.msk.bf16.vlgmr.msra.gmra.mrb[0].mxu0 %vm727_vm3, %v1909_v48 }
0x1002   : > { %v1986_v50 = vpop.f32.mrb[0].mxu0 }
0x1003   : > { %v1987_v51 = vadd.f32 %v2272_v49, %v1986_v50  ;;  %v2497_v52 = vpop.f32.mrb[1].mxu0 }
0x1004   : > { %v1989_v54 = vpop.f32.mrb[2].mxu0 }
0x1005   : > { %v2498_v32 = vpop.f32.mrb[3].mxu0  ;;  %v1994_v55 = vsel %vm727_vm3, %v1987_v51, 0.0 }
0x1006   : > { %1995 = vadd.xlane.f32.xlu0 %v1994_v55 }
0x1093   : > { %v1996_v56 = vpop.xlane.xlu0 %1995 }
0x1094   : > { %v1997_v58 = vmul.f32 0.015625, %v1996_v56 }
0x1096   : > { %v1998_v59 = vsub.f32 %v1987_v51, %v1997_v58 }
0x1098   : > { %v1999_v60 = vmul.f32 %v1998_v59, %v1998_v59 }
0x109a   : > { %v2000_v61 = vsel %vm727_vm3, %v1999_v60, 0.0 }
0x109b   : > { %2001 = vadd.xlane.f32.xlu0 %v2000_v61 }
0x1128   : > { %v2002_v62 = vpop.xlane.xlu0 %2001 }
0x1129   : > { %v2003_v63 = vmul.f32 0.015625, %v2002_v62 }
0x112b   : > { %v2004_v0 = vadd.f32 1e-05, %v2003_v63 }
0x112d   : > { %2661 = vrsqrt.f32 %v2004_v0 }
0x1137   : > { %v2662_v1 = vpop.eup %2661 }
0x1138   : > { %v2006_v2 = vmul.f32 %v2662_v1, %v1998_v59 }
0x113a   : > { %v2013_v3 = vmul.f32 %v2278_v53, %v2006_v2 }
0x113c   : > { %v2020_v4 = vadd.f32 %v2279_v57, %v2013_v3 }
0x113e   : > { %2021 = vst.msk [vmem:[%s602_s12] sm:$0xff] %vm727_vm3, %v2020_v4 }
0x113f PF: > { %s3342_s16 = sld [smem:[#allocation10_spill]]  ;;  %s3345_s13 = sld [smem:[#allocation25_spill]] }
0x1140   : > { %s3343_s24 = sld [smem:[#allocation8_spill]]  ;;  %s2036_s17 = sshll.u32 %s602_s12, 4  ;;  %s2037_s17 = int_to_ptr.vmem [resolvable:$true] %s2036_s17 }
0x1141   : > { %s2663_s29 = scalar_lea.vmem %s2037_s17, 128  ;;  %s2772_s30 = smov [#allocation4]  }
0x1142   : > { %p2664_p2 = scmp.ne.s32.totalorder %s2037_s17, %s2663_s29  ;;  %s2667_s0 = sshll.u32 %s2772_s30, 4  ;;  %s2668_s0 = int_to_ptr.vmem [resolvable:$false] %s2667_s0 }
0x1143   : > { %s2669_s18 = scalar_lea.vmem %s2668_s0, 256  ;;  %p2670_p6 = scmp.lt.s32.totalorder %s2037_s17, %s2668_s0 }
0x1144   : > { %p2665_p4 = pnand %p2664_p2, %p2902_p3  ;;  %p2671_p7 = scmp.lt.s32.totalorder %s2669_s18, %s2663_s29 }
0x1145   : > { %s2281_s4 = sshll.u32 %s3342_s16, 7 }
0x1146   : > { %s3234_s22 = scalar_lea.hbm %s3345_s13, %s2281_s4  ;;  %s3346_s21 = sand.u32 1, %s3343_s24  }
0x1147   : > { %s2023_s26 = scalar_lea.sflag [#allocation5], %s3346_s21  ;;  %p2666_p5 = pneg %p2665_p4 }
0x1148   : > { %p2672_p8 = por %p2671_p7, %p2670_p6 }
0x114a   : > { %p2673_p10 = pnand %p2672_p8, %p2666_p5 }
0x114c   : > { %2676 = shalt.err (!%p2673_p10)
}
0x114d   : > { %s2677_s23 = scalar_lea.hbm %s3234_s22, 128  ;;  %s2681_s14 = scalar_lea.hbm %s3345_s13, 256 }
0x114e   : > { %p2678_p11 = scmp.ne.s32.totalorder %s3234_s22, %s2677_s23  ;;  %p2682_p0 = scmp.lt.u32.totalorder %s3234_s22, %s3345_s13 }
0x114f   : > { %p2683_p1 = scmp.lt.u32.totalorder %s2681_s14, %s2677_s23  ;;  %p2685_p4 = scmp.lt.u32.totalorder %s2677_s23, %s3234_s22 }
0x1150   : > { %p2679_p12 = pnand %p2678_p11, %p2902_p3 }
0x1151   : > { %p2684_p2 = por %p2683_p1, %p2682_p0 }
0x1152   : > { %p2680_p13 = pneg %p2679_p12 }
0x1153   : > { %p2686_p5 = por %p2685_p4, %p2684_p2 }
0x1155   : > { %p2687_p6 = pnand %p2686_p5, %p2680_p13 }
0x1157   : > { %2690 = shalt.err (!%p2687_p6)
}
0x1158   : > { %2499 = dma.vmem_to_hbm [thread:$0]  (%p2902_p3), %s2037_s17, 128, %s3234_s22, %s2023_s26  }
0x1159 PF: > { %s3347_s27 = sld [smem:[#allocation13_spill]]  ;;  %s3348_s16 = sld [smem:[#allocation7_spill]] }
0x115f   : > { %p2505_p7 = scmp.ge.s32.totalorder %s3347_s27, 2  ;;  %s2048_s4 = sand.u32 1, %s3348_s16  }
0x1160   : > { %s2049_s5 = scalar_lea.sflag [#allocation5], %s2048_s4 }
0x1161   : > { %p2502_p8 = pnand %p2505_p7, %p2912_p9 }
0x1163   : > { %2724 = dma.done.wait (!%p2502_p8), %s2049_s5, 128  }
0x1164   : > { %2726 = vsyncadd (!%p2502_p8), %s2049_s5, 4294967168  ;;  %s28_s25 = sadd.s32 1, %s3347_s27   ;;  %s3350_s18 = sld [smem:[#allocation8_spill]] }
0x1165   : > { %p25_p10 = scmp.ge.s32.totalorder %s28_s25, 6   ;;  %s3351_s19 = sld [smem:[#allocation9_spill]] }
0x1166   : > { %s3352_s20 = sld [smem:[#allocation18_spill]]  ;;  %s3353_s21 = sld [smem:[#allocation11_spill]] }
0x1167   : > { %s3354_s22 = sld [smem:[#allocation12_spill]]  ;;  %s3355_s23 = sld [smem:[#allocation14_spill]] }
0x1168   : > { %s3356_s24 = sld [smem:[#allocation16_spill]]  ;;  %27 = sbr.rel (!%p25_p10) target bundleno = 13 (0xd), region = 144 }
0x116f   :  { %2054 = vsyncpa [#allocation5], 1 }
0x1170   :  { %2056 = vsyncpa [#allocation5 + $0x1], 1 }

</bundles_post_ra>
